<compile_context>
chip_gen: v5e
topology: v5e:2x2
jax: 0.10.0
libtpu: 0.0.40
codegen_flags: <defaults>
</compile_context>

<pallas_src>
import functools

import jax
import jax.numpy as jnp
from jax.experimental import pallas as pl
from jax.experimental.pallas import tpu as pltpu


_VMEM_LIMIT = 32 * 1024 * 1024  # explicit scoped-VMEM limit (>= v5e's 16 MiB default)


# ---------------------------------------------------------------------------
# Pallas kernel 1: fused matmul + (BN-folded) bias + ReLU   (conv1 / conv2)
# ---------------------------------------------------------------------------
def _mm_bias_relu_kernel(x_ref, w_ref, b_ref, o_ref, *, relu):
    acc = jnp.dot(x_ref[...], w_ref[...], preferred_element_type=jnp.float32)
    y = acc + b_ref[...]            # f32 epilogue
    if relu:
        y = jnp.maximum(y, 0.0)
    o_ref[...] = y.astype(o_ref.dtype)


def matmul_bias_relu(x, w, b, *, relu, out_dtype, block_m=512):
    """y = relu?(x @ w + b);  x:[M,K] bf16, w:[K,N] bf16, b:[1,N] f32."""
    M, K = x.shape
    Kw, N = w.shape
    assert K == Kw and b.shape == (1, N)
    # Single whole-array block for small M (full dims are always legal); otherwise
    # tile M so v7x can shard the parallel axis across its two TensorCores.
    tm = M if M <= block_m else block_m
    grid_m = pl.cdiv(M, tm)
    return pl.pallas_call(
        functools.partial(_mm_bias_relu_kernel, relu=relu),
        out_shape=jax.ShapeDtypeStruct((M, N), out_dtype),
        grid=(grid_m,),
        in_specs=[
            pl.BlockSpec((tm, K), lambda i: (i, 0)),
            pl.BlockSpec((K, N), lambda i: (0, 0)),
            pl.BlockSpec((1, N), lambda i: (0, 0)),
        ],
        out_specs=pl.BlockSpec((tm, N), lambda i: (i, 0)),
        compiler_params=pltpu.CompilerParams(
            dimension_semantics=("parallel",),
            vmem_limit_bytes=_VMEM_LIMIT,
        ),
    )(x, w, b)


# ---------------------------------------------------------------------------
# Pallas kernel 2: conv3 (im2col matmul + folded BN + ReLU) with the Linear
# head fused into the epilogue.  Patch rows are ordered (spatial r, batch b),
# so the head is npos small static-slice matmuls — no strided access needed.
# ---------------------------------------------------------------------------
def _conv3_head_kernel(p_ref, w3_ref, b3_ref, wh_ref, bh_ref, o_ref,
                       *, batch, npos, c3):
    y = jnp.dot(p_ref[...], w3_ref[...], preferred_element_type=jnp.float32)
    y = jnp.maximum(y + b3_ref[...], 0.0)                 # [npos*batch, c3], f32
    outputs = bh_ref.shape[1]
    acc = jnp.broadcast_to(bh_ref[...], (batch, outputs))
    for r in range(npos):                                 # npos is tiny (e.g. 4)
        acc = acc + jnp.dot(
            y[r * batch:(r + 1) * batch, :],
            wh_ref[r * c3:(r + 1) * c3, :],
            preferred_element_type=jnp.float32,
        )
    o_ref[...] = acc


def conv3_head(patches, w3, b3, wh, bh, *, batch, npos):
    c3 = w3.shape[1]
    outputs = wh.shape[1]
    vmem = pl.BlockSpec(memory_space=pltpu.MemorySpace.VMEM)
    return pl.pallas_call(
        functools.partial(_conv3_head_kernel, batch=batch, npos=npos, c3=c3),
        out_shape=jax.ShapeDtypeStruct((batch, outputs), jnp.float32),
        in_specs=[vmem] * 5,
        out_specs=vmem,
        compiler_params=pltpu.CompilerParams(vmem_limit_bytes=_VMEM_LIMIT),
    )(patches, w3, b3, wh, bh)


# ---------------------------------------------------------------------------
# Glue: im2col patch extraction (NHWC), row order (b, oh, ow), feature (kh, kw, c)
# ---------------------------------------------------------------------------
def im2col(x, k, s):
    B, H, W, C = x.shape
    OH = (H - k) // s + 1
    OW = (W - k) // s + 1
    patches = []
    for di in range(k):
        for dj in range(k):
            sl = jax.lax.slice(
                x,
                (0, di, dj, 0),
                (B, di + s * (OH - 1) + 1, dj + s * (OW - 1) + 1, C),
                (1, s, s, 1),
            )
            patches.append(sl)                       # [B, OH, OW, C]
    p = jnp.stack(patches, axis=3)                   # [B, OH, OW, k*k, C]
    return p.reshape(B * OH * OW, k * k * C), B, OH, OW


# ---------------------------------------------------------------------------
# Parameters (matches PyTorch module shapes) + one-time prep (BN folding etc.)
# ---------------------------------------------------------------------------
def conv2_size_out(size, kernel_size=5, stride=2):
    return (size - (kernel_size - 1) - 1) // stride + 1


def init_params(key, h, w, outputs):
    convs = [(3, 16), (16, 32), (32, 32)]
    params = {}
    keys = jax.random.split(key, len(convs) + 1)
    for i, (cin, cout) in enumerate(convs):
        kw_, kb_, kg_, kbe, kme, kva = jax.random.split(keys[i], 6)
        params[f"conv{i+1}"] = dict(
            w=0.05 * jax.random.normal(kw_, (cout, cin, 5, 5), jnp.float32),
            b=0.01 * jax.random.normal(kb_, (cout,), jnp.float32),
            bn_gamma=1.0 + 0.1 * jax.random.normal(kg_, (cout,), jnp.float32),
            bn_beta=0.05 * jax.random.normal(kbe, (cout,), jnp.float32),
            bn_mean=0.02 * jax.random.normal(kme, (cout,), jnp.float32),
            bn_var=1.0 + 0.1 * jnp.abs(jax.random.normal(kva, (cout,), jnp.float32)),
        )
    convw = conv2_size_out(conv2_size_out(conv2_size_out(w)))
    convh = conv2_size_out(conv2_size_out(conv2_size_out(h)))
    lin_in = convw * convh * 32
    kh_, kb2 = jax.random.split(keys[-1])
    params["head"] = dict(
        w=0.05 * jax.random.normal(kh_, (outputs, lin_in), jnp.float32),
        b=0.01 * jax.random.normal(kb2, (outputs,), jnp.float32),
    )
    return params


def prepare_params(params, h, w, eps=1e-5):
    """One-time prep: fold BN+bias into matmul weights, reshape, cast to bf16."""
    prep = {}
    for i in range(1, 4):
        p = params[f"conv{i}"]
        cout = p["w"].shape[0]
        # [cout, cin, kh, kw] -> [kh, kw, cin, cout] -> [kh*kw*cin, cout]
        wm = jnp.transpose(p["w"], (2, 3, 1, 0)).reshape(-1, cout)
        scale = p["bn_gamma"] / jnp.sqrt(p["bn_var"] + eps)
        prep[f"w{i}"] = (wm * scale[None, :]).astype(jnp.bfloat16)
        shift = (p["b"] - p["bn_mean"]) * scale + p["bn_beta"]
        prep[f"b{i}"] = shift.reshape(1, -1).astype(jnp.float32)
    convw = conv2_size_out(conv2_size_out(conv2_size_out(w)))
    convh = conv2_size_out(conv2_size_out(conv2_size_out(h)))
    npos = convh * convw
    wh = params["head"]["w"]                       # [outputs, c3*npos], NCHW flatten
    outputs, lin_in = wh.shape
    c3 = lin_in // npos
    # Permute head weight rows to the kernel-side (spatial r, channel c) order.
    prep["wh"] = (wh.reshape(outputs, c3, npos).transpose(2, 1, 0)
                    .reshape(npos * c3, outputs).astype(jnp.float32))
    prep["bh"] = params["head"]["b"].reshape(1, -1).astype(jnp.float32)
    return prep


# ---------------------------------------------------------------------------
# Forward pass
# ---------------------------------------------------------------------------
def dqn_forward(prep, x_nchw):
    x = jnp.transpose(x_nchw, (0, 2, 3, 1)).astype(jnp.bfloat16)  # NCHW -> NHWC, bf16
    for i in (1, 2):
        cols, B, OH, OW = im2col(x, 5, 2)
        y = matmul_bias_relu(cols, prep[f"w{i}"], prep[f"b{i}"],
                             relu=True, out_dtype=jnp.bfloat16)
        x = y.reshape(B, OH, OW, -1)
    # conv3 + head, fused in one kernel.  Reorder patch rows (b, r) -> (r, b) so the
    # head consumes conv3's output with contiguous static slices (and matches the
    # PyTorch NCHW .view() flatten order via the permuted head weight).
    cols, B, OH, OW = im2col(x, 5, 2)
    npos = OH * OW
    cols = cols.reshape(B, npos, -1).transpose(1, 0, 2).reshape(npos * B, -1)
    return conv3_head(cols, prep["w3"], prep["b3"], prep["wh"], prep["bh"],
                      batch=B, npos=npos)


if __name__ == "__main__":
    H, W, OUTPUTS, BATCH = 40, 40, 4, 2
    key = jax.random.PRNGKey(0)
    pkey, xkey = jax.random.split(key)
    params = init_params(pkey, H, W, OUTPUTS)
    prep = prepare_params(params, H, W)          # hoisted one-time parameter prep
    x = jax.random.normal(xkey, (BATCH, 3, H, W), jnp.float32)   # NCHW like PyTorch

    fwd = jax.jit(dqn_forward)
    out = jax.block_until_ready(fwd(prep, x))
    assert out.shape == (BATCH, OUTPUTS), out.shape
    assert bool(jnp.all(jnp.isfinite(out)))
    print("KERNEL_OK")
</pallas_src>

<mosaic_0001>
module attributes {stable_mosaic.version = 11 : i64} {
  func.func @_mm_bias_relu_kernel(%arg0: i32, %arg1: memref<512x75xbf16, #tpu.memory_space<vmem>>, %arg2: memref<75x16xbf16, #tpu.memory_space<vmem>>, %arg3: memref<1x16xf32, #tpu.memory_space<vmem>>, %arg4: memref<512x16xbf16, #tpu.memory_space<vmem>>) attributes {dimension_semantics = [#tpu.dimension_semantics<parallel>], iteration_bounds = array<i64: 2>, scalar_prefetch = 0 : i64, scratch_operands = 0 : i64, tpu.core_type = #tpu.core_type<tc>, window_params = [{transform_indices = @transform_0, window_bounds = array<i64: 512, 75>}, {pipeline_mode = #tpu.pipeline_mode<synchronous>, transform_indices = @transform_1, window_bounds = array<i64: 75, 16>}, {pipeline_mode = #tpu.pipeline_mode<synchronous>, transform_indices = @transform_2, window_bounds = array<i64: 1, 16>}, {transform_indices = @transform_3, window_bounds = array<i64: 512, 16>}]} {
    %c0 = arith.constant 0 : index
    %c0_0 = arith.constant 0 : index
    %0 = vector.load %arg1[%c0, %c0_0] : memref<512x75xbf16, #tpu.memory_space<vmem>>, vector<512x75xbf16>
    %c0_1 = arith.constant 0 : index
    %c0_2 = arith.constant 0 : index
    %1 = vector.load %arg2[%c0_1, %c0_2] : memref<75x16xbf16, #tpu.memory_space<vmem>>, vector<75x16xbf16>
    %cst = arith.constant dense<0.000000e+00> : vector<512x16xf32>
    %2 = tpu.matmul %0, %1, %cst {dimension_numbers = #tpu.dot_dimension_numbers<[1], [0], [0], [1], [0, 0, 1, 1], [], []>} : vector<512x75xbf16>, vector<75x16xbf16>, vector<512x16xf32> -> vector<512x16xf32>
    %c0_3 = arith.constant 0 : index
    %c0_4 = arith.constant 0 : index
    %3 = vector.load %arg3[%c0_3, %c0_4] : memref<1x16xf32, #tpu.memory_space<vmem>>, vector<1x16xf32>
    %4 = vector.broadcast %3 : vector<1x16xf32> to vector<512x16xf32>
    %5 = arith.addf %2, %4 : vector<512x16xf32>
    %cst_5 = arith.constant 0.000000e+00 : f32
    %6 = vector.broadcast %cst_5 : f32 to vector<512x16xf32>
    %7 = arith.maximumf %5, %6 : vector<512x16xf32>
    %8 = arith.truncf %7 : vector<512x16xf32> to vector<512x16xbf16>
    %c0_6 = arith.constant 0 : index
    %c0_7 = arith.constant 0 : index
    %9 = vector.load %arg4[%c0_6, %c0_7] : memref<512x16xbf16, #tpu.memory_space<vmem>>, vector<512x16xbf16>
    tpu.vector_store %arg4[%c0_6, %c0_7], %8 {strides = array<i32>} : memref<512x16xbf16, #tpu.memory_space<vmem>>, vector<512x16xbf16>,
    return
  }
  func.func @transform_0(%arg0: i32) -> (i32, i32) {
    %c0_i32 = arith.constant 0 : i32
    %c0_i32_0 = arith.constant 0 : i32
    return %arg0, %c0_i32 : i32, i32
  }
  func.func @transform_1(%arg0: i32) -> (i32, i32) {
    %c0_i32 = arith.constant 0 : i32
    %c0_i32_0 = arith.constant 0 : i32
    %c0_i32_1 = arith.constant 0 : i32
    return %c0_i32, %c0_i32_0 : i32, i32
  }
  func.func @transform_2(%arg0: i32) -> (i32, i32) {
    %c0_i32 = arith.constant 0 : i32
    %c0_i32_0 = arith.constant 0 : i32
    %c0_i32_1 = arith.constant 0 : i32
    return %c0_i32, %c0_i32_0 : i32, i32
  }
  func.func @transform_3(%arg0: i32) -> (i32, i32) {
    %c0_i32 = arith.constant 0 : i32
    %c0_i32_0 = arith.constant 0 : i32
    return %arg0, %c0_i32 : i32, i32
  }
}

module attributes {stable_mosaic.version = 11 : i64} {
  func.func @_mm_bias_relu_kernel(%arg0: i32, %arg1: memref<98x400xbf16, #tpu.memory_space<vmem>>, %arg2: memref<400x32xbf16, #tpu.memory_space<vmem>>, %arg3: memref<1x32xf32, #tpu.memory_space<vmem>>, %arg4: memref<98x32xbf16, #tpu.memory_space<vmem>>) attributes {dimension_semantics = [#tpu.dimension_semantics<parallel>], iteration_bounds = array<i64: 1>, scalar_prefetch = 0 : i64, scratch_operands = 0 : i64, tpu.core_type = #tpu.core_type<tc>, window_params = [{transform_indices = @transform_0, window_bounds = array<i64: 98, 400>}, {pipeline_mode = #tpu.pipeline_mode<synchronous>, transform_indices = @transform_1, window_bounds = array<i64: 400, 32>}, {pipeline_mode = #tpu.pipeline_mode<synchronous>, transform_indices = @transform_2, window_bounds = array<i64: 1, 32>}, {transform_indices = @transform_3, window_bounds = array<i64: 98, 32>}]} {
    %c0 = arith.constant 0 : index
    %c0_0 = arith.constant 0 : index
    %0 = vector.load %arg1[%c0, %c0_0] : memref<98x400xbf16, #tpu.memory_space<vmem>>, vector<98x400xbf16>
    %c0_1 = arith.constant 0 : index
    %c0_2 = arith.constant 0 : index
    %1 = vector.load %arg2[%c0_1, %c0_2] : memref<400x32xbf16, #tpu.memory_space<vmem>>, vector<400x32xbf16>
    %cst = arith.constant dense<0.000000e+00> : vector<98x32xf32>
    %2 = tpu.matmul %0, %1, %cst {dimension_numbers = #tpu.dot_dimension_numbers<[1], [0], [0], [1], [0, 0, 1, 1], [], []>} : vector<98x400xbf16>, vector<400x32xbf16>, vector<98x32xf32> -> vector<98x32xf32>
    %c0_3 = arith.constant 0 : index
    %c0_4 = arith.constant 0 : index
    %3 = vector.load %arg3[%c0_3, %c0_4] : memref<1x32xf32, #tpu.memory_space<vmem>>, vector<1x32xf32>
    %4 = vector.broadcast %3 : vector<1x32xf32> to vector<98x32xf32>
    %5 = arith.addf %2, %4 : vector<98x32xf32>
    %cst_5 = arith.constant 0.000000e+00 : f32
    %6 = vector.broadcast %cst_5 : f32 to vector<98x32xf32>
    %7 = arith.maximumf %5, %6 : vector<98x32xf32>
    %8 = arith.truncf %7 : vector<98x32xf32> to vector<98x32xbf16>
    %c0_6 = arith.constant 0 : index
    %c0_7 = arith.constant 0 : index
    %9 = vector.load %arg4[%c0_6, %c0_7] : memref<98x32xbf16, #tpu.memory_space<vmem>>, vector<98x32xbf16>
    tpu.vector_store %arg4[%c0_6, %c0_7], %8 {strides = array<i32>} : memref<98x32xbf16, #tpu.memory_space<vmem>>, vector<98x32xbf16>,
    return
  }
  func.func @transform_0(%arg0: i32) -> (i32, i32) {
    %c0_i32 = arith.constant 0 : i32
    %c0_i32_0 = arith.constant 0 : i32
    return %arg0, %c0_i32 : i32, i32
  }
  func.func @transform_1(%arg0: i32) -> (i32, i32) {
    %c0_i32 = arith.constant 0 : i32
    %c0_i32_0 = arith.constant 0 : i32
    %c0_i32_1 = arith.constant 0 : i32
    return %c0_i32, %c0_i32_0 : i32, i32
  }
  func.func @transform_2(%arg0: i32) -> (i32, i32) {
    %c0_i32 = arith.constant 0 : i32
    %c0_i32_0 = arith.constant 0 : i32
    %c0_i32_1 = arith.constant 0 : i32
    return %c0_i32, %c0_i32_0 : i32, i32
  }
  func.func @transform_3(%arg0: i32) -> (i32, i32) {
    %c0_i32 = arith.constant 0 : i32
    %c0_i32_0 = arith.constant 0 : i32
    return %arg0, %c0_i32 : i32, i32
  }
}

module attributes {stable_mosaic.version = 11 : i64} {
  func.func @_conv3_head_kernel(%arg0: memref<8x800xbf16, #tpu.memory_space<vmem>>, %arg1: memref<800x32xbf16, #tpu.memory_space<vmem>>, %arg2: memref<1x32xf32, #tpu.memory_space<vmem>>, %arg3: memref<128x4xf32, #tpu.memory_space<vmem>>, %arg4: memref<1x4xf32, #tpu.memory_space<vmem>>, %arg5: memref<2x4xf32, #tpu.memory_space<vmem>>) attributes {dimension_semantics = [], scalar_prefetch = 0 : i64, scratch_operands = 0 : i64, tpu.core_type = #tpu.core_type<tc>} {
    %c0 = arith.constant 0 : index
    %c0_0 = arith.constant 0 : index
    %0 = vector.load %arg0[%c0, %c0_0] : memref<8x800xbf16, #tpu.memory_space<vmem>>, vector<8x800xbf16>
    %c0_1 = arith.constant 0 : index
    %c0_2 = arith.constant 0 : index
    %1 = vector.load %arg1[%c0_1, %c0_2] : memref<800x32xbf16, #tpu.memory_space<vmem>>, vector<800x32xbf16>
    %cst = arith.constant dense<0.000000e+00> : vector<8x32xf32>
    %2 = tpu.matmul %0, %1, %cst {dimension_numbers = #tpu.dot_dimension_numbers<[1], [0], [0], [1], [0, 0, 1, 1], [], []>} : vector<8x800xbf16>, vector<800x32xbf16>, vector<8x32xf32> -> vector<8x32xf32>
    %c0_3 = arith.constant 0 : index
    %c0_4 = arith.constant 0 : index
    %3 = vector.load %arg2[%c0_3, %c0_4] : memref<1x32xf32, #tpu.memory_space<vmem>>, vector<1x32xf32>
    %4 = vector.broadcast %3 : vector<1x32xf32> to vector<8x32xf32>
    %5 = arith.addf %2, %4 : vector<8x32xf32>
    %cst_5 = arith.constant 0.000000e+00 : f32
    %6 = vector.broadcast %cst_5 : f32 to vector<8x32xf32>
    %7 = arith.maximumf %5, %6 : vector<8x32xf32>
    %c0_6 = arith.constant 0 : index
    %c0_7 = arith.constant 0 : index
    %8 = vector.load %arg4[%c0_6, %c0_7] : memref<1x4xf32, #tpu.memory_space<vmem>>, vector<1x4xf32>
    %9 = vector.shape_cast %8 : vector<1x4xf32> to vector<1x4xf32>
    %10 = vector.broadcast %9 : vector<1x4xf32> to vector<2x4xf32>
    %11 = vector.extract_strided_slice %7 {offsets = [0, 0], sizes = [2, 32], strides = [1, 1]} : vector<8x32xf32> to vector<2x32xf32>
    %c0_8 = arith.constant 0 : index
    %c0_9 = arith.constant 0 : index
    %12 = vector.load %arg3[%c0_8, %c0_9] : memref<128x4xf32, #tpu.memory_space<vmem>>, vector<32x4xf32>
    %cst_10 = arith.constant dense<0.000000e+00> : vector<2x4xf32>
    %13 = tpu.matmul %11, %12, %cst_10 {dimension_numbers = #tpu.dot_dimension_numbers<[1], [0], [0], [1], [0, 0, 1, 1], [], []>} : vector<2x32xf32>, vector<32x4xf32>, vector<2x4xf32> -> vector<2x4xf32>
    %14 = arith.addf %10, %13 : vector<2x4xf32>
    %15 = vector.extract_strided_slice %7 {offsets = [2, 0], sizes = [2, 32], strides = [1, 1]} : vector<8x32xf32> to vector<2x32xf32>
    %c32 = arith.constant 32 : index
    %c0_11 = arith.constant 0 : index
    %16 = vector.load %arg3[%c32, %c0_11] : memref<128x4xf32, #tpu.memory_space<vmem>>, vector<32x4xf32>
    %cst_12 = arith.constant dense<0.000000e+00> : vector<2x4xf32>
    %17 = tpu.matmul %15, %16, %cst_12 {dimension_numbers = #tpu.dot_dimension_numbers<[1], [0], [0], [1], [0, 0, 1, 1], [], []>} : vector<2x32xf32>, vector<32x4xf32>, vector<2x4xf32> -> vector<2x4xf32>
    %18 = arith.addf %14, %17 : vector<2x4xf32>
    %19 = vector.extract_strided_slice %7 {offsets = [4, 0], sizes = [2, 32], strides = [1, 1]} : vector<8x32xf32> to vector<2x32xf32>
    %c64 = arith.constant 64 : index
    %c0_13 = arith.constant 0 : index
    %20 = vector.load %arg3[%c64, %c0_13] : memref<128x4xf32, #tpu.memory_space<vmem>>, vector<32x4xf32>
    %cst_14 = arith.constant dense<0.000000e+00> : vector<2x4xf32>
    %21 = tpu.matmul %19, %20, %cst_14 {dimension_numbers = #tpu.dot_dimension_numbers<[1], [0], [0], [1], [0, 0, 1, 1], [], []>} : vector<2x32xf32>, vector<32x4xf32>, vector<2x4xf32> -> vector<2x4xf32>
    %22 = arith.addf %18, %21 : vector<2x4xf32>
    %23 = vector.extract_strided_slice %7 {offsets = [6, 0], sizes = [2, 32], strides = [1, 1]} : vector<8x32xf32> to vector<2x32xf32>
    %c96 = arith.constant 96 : index
    %c0_15 = arith.constant 0 : index
    %24 = vector.load %arg3[%c96, %c0_15] : memref<128x4xf32, #tpu.memory_space<vmem>>, vector<32x4xf32>
    %cst_16 = arith.constant dense<0.000000e+00> : vector<2x4xf32>
    %25 = tpu.matmul %23, %24, %cst_16 {dimension_numbers = #tpu.dot_dimension_numbers<[1], [0], [0], [1], [0, 0, 1, 1], [], []>} : vector<2x32xf32>, vector<32x4xf32>, vector<2x4xf32> -> vector<2x4xf32>
    %26 = arith.addf %22, %25 : vector<2x4xf32>
    %c0_17 = arith.constant 0 : index
    %c0_18 = arith.constant 0 : index
    %27 = vector.load %arg5[%c0_17, %c0_18] : memref<2x4xf32, #tpu.memory_space<vmem>>, vector<2x4xf32>
    tpu.vector_store %arg5[%c0_17, %c0_18], %26 {strides = array<i32>} : memref<2x4xf32, #tpu.memory_space<vmem>>, vector<2x4xf32>,
    return
  }
}

</mosaic_0001>

<bundles_post_ra>
// kernel: dqn_forward.3
= control target key start
LH: loop header
LB: loop body
LE: loop exit
PB: predicated region body
PF: predicated region fallthrough
CT: control target
= control target key end

     0   :  { %s1724_s12 = smov 0   ;;  %s1726_s13 = smov 0   ;;  %s2187_s0 = inlined_call_operand.vmem [shape: bf16[648,75], index: 0, kind: input, shape index: {}]   ;;  %s2188_s1 = inlined_call_operand.vmem [shape: bf16[75,16], index: 1, kind: input, shape index: {}]   ;;  %s2189_s2 = inlined_call_operand.vmem [shape: f32[1,16], index: 2, kind: input, shape index: {}]   ;;  %s2190_s3 = inlined_call_operand.vmem [shape: bf16[648,16], index: 3, kind: output, shape index: {}]  }
   0x1   :  { %s1728_s14 = smov 0  }
   0x2 LB: > { %s1737_s15 = sadd.s32 4294967295, %s1669_s14   ;;  %s1739_s16 = sadd.s32 1, %s1669_s14   ;;  %s1669_s14 = sphi %s1728_s14, %s2199_s14   ;;  %s1665_s13 = sphi %s1726_s13, %s2198_s13   ;;  %s1661_s12 = sphi %s1724_s12, %s2197_s12  }
   0x3   : > { %s85_s17 = ssub.s32 %s1669_s14, %s1739_s16  ;;  %s88_s18 = sadd.s32 1, %s1665_s13 }
   0x4   : > { %p86_p0 = scmp.eq.s32.totalorder %s85_s17, 0  ;;  %p98_p1 = scmp.ne.s32.totalorder %s1665_s13, %s1661_s12 }
   0x5   : > { %p99_p2 = scmp.eq.s32.totalorder %s1737_s15, 1  ;;  %p1269_p3 = scmp.ge.s32.totalorder %s1669_s14, 1 }
   0x6   : > { %s1747_s19 = scalar_select %p86_p0, %s1665_s13, %s88_s18  }
   0x7   : > { %p1749_p4 = por %p99_p2, %p98_p1  ;;  %p146_p5 = scmp.lt.s32.totalorder %s1669_s14, 3 }
   0x9   : > { %p147_p6 = pnand %p1269_p3, %p146_p5 }
   0xa   : > { %s1760_s25 = sshll.u32 (!%p147_p6), %s1737_s15, 6  ;;  %s170_s18 = sand.u32 (!%p147_p6), 1, %s1661_s12  }
   0xb   : > { %150 = sbr.rel (%p147_p6) target bundleno = 366 (0x16e), region = 32  ;;  %p178_p7 = scmp.lt.s32.totalorder (!%p147_p6), %s1760_s25, 80 }
   0xc   : > { %s1270_s21 = sshll.u32 (!%p147_p6), %s170_s18, 8 }
   0xd   : > { %s1853_s22 = scalar_lea.vmem (!%p147_p6), [#allocation2], %s1270_s21  }
  0x10   : > { %v1419_v0 = vld [vmem:[%s2188_s1 + $0x20] sm:$0xf]  ;;  %v1506_v1 = vld [vmem:[%s2188_s1 + $0x20] sm:$0x30]  ;;  %vm557_vm0 = vcmask 1044480   ;;  %vm558_vm1 = vcmask 1045504  }
  0x11   : > { %v1420_v2 = vor.u32 %v1506_v1, %v1419_v0  ;;  %v1703_v3 = vmov 65535   ;;  %v1505_v7 = vld [vmem:[%s2188_s1 + $0x18] sm:$0xff]  ;;  %v1504_v8 = vld [vmem:[%s2188_s1 + $0x10] sm:$0xff]  ;;  %s179_s30 = scalar_select %p178_p7, %s1760_s25, 80  ;;  %v1503_v9 = vld [vmem:[%s2188_s1 + $0x8] sm:$0xff]  ;;  %vm460_vm2 = vcmask 613376  }
  0x12   : > { %v559_v4 = vsel %vm557_vm0, 4294967295, %v1703_v3  ;;  %v1502_v10 = vld [vmem:[%s2188_s1] sm:$0xff]  ;;  %vm861_vm3 = vcmask 125952   ;;  %s934_s12 = ssub.s32 (%p1749_p4), 81, %s1760_s25  ;;  %s1507_s23 = sshll.u32 (%p1749_p4), %s1737_s15, 8 }
  0x13   : > { %v560_v5 = vsel %vm558_vm1, %v559_v4, 0  ;;  %s1272_s6 = sshll.u32 %s179_s30, 2  ;;  %v1848_v43 = vld [vmem:[%s2189_s2] ss:$0 sm:$0xff]  ;;  %p935_p8 = scmp.lt.s32.totalorder (%p1749_p4), %s934_s12, 64 }
  0x14   : > { %v562_v6 = vand.u32 %v1420_v2, %v560_v5  ;;  %s1779_s11 = scalar_lea.vmem %s2187_s0, %s1272_s6  ;;  %s2052_s27 = scalar_lea.vmem (%p1749_p4), %s2190_s3, %s1507_s23  }
  0x15   : > { %v1470_v11 = vld [vmem:[%s1779_s11] sm:$0xff]  ;;  %v1471_v15 = vld [vmem:[%s1779_s11 + $0x8] sm:$0xff]  ;;  %v1472_v19 = vld [vmem:[%s1779_s11 + $0x10] sm:$0xff] }
  0x16   : > { %567 = vmatpush.bf16.msra.mxu0 %v562_v6  ;;  %1510 = vmatpush.bf16.msra.mxu1 %v562_v6  ;;  %v1478_v12 = vld [vmem:[%s1779_s11 + $0x40] sm:$0xff]  ;;  %v1479_v16 = vld [vmem:[%s1779_s11 + $0x48] sm:$0xff]  ;;  %v1480_v20 = vld [vmem:[%s1779_s11 + $0x50] sm:$0xff] }
  0x17   : > { %1511 = vmatpush.bf16.msra.mxu2 %v562_v6  ;;  %1512 = vmatpush.bf16.msra.mxu3 %v562_v6  ;;  %v1486_v13 = vld [vmem:[%s1779_s11 + $0x80] sm:$0xff]  ;;  %v1487_v17 = vld [vmem:[%s1779_s11 + $0x88] sm:$0xff]  ;;  %v1488_v21 = vld [vmem:[%s1779_s11 + $0x90] sm:$0xff] }
  0x18   : > { %v1494_v14 = vld [vmem:[%s1779_s11 + $0xc0] sm:$0xff]  ;;  %v1495_v18 = vld [vmem:[%s1779_s11 + $0xc8] sm:$0xff]  ;;  %v1496_v22 = vld [vmem:[%s1779_s11 + $0xd0] sm:$0xff] }
  0x19   : > { %v1473_v23 = vld [vmem:[%s1779_s11 + $0x18] sm:$0xff]  ;;  %v1474_v27 = vld [vmem:[%s1779_s11 + $0x20] sm:$0xff]  ;;  %v1475_v31 = vld [vmem:[%s1779_s11 + $0x28] sm:$0xff] }
  0x1a   : > { %568 = vmatpush.bf16.msra.mxu0 %v1505_v7  ;;  %1513 = vmatpush.bf16.msra.mxu1 %v1505_v7  ;;  %v1481_v24 = vld [vmem:[%s1779_s11 + $0x58] sm:$0xff]  ;;  %v1482_v28 = vld [vmem:[%s1779_s11 + $0x60] sm:$0xff]  ;;  %v1483_v32 = vld [vmem:[%s1779_s11 + $0x68] sm:$0xff] }
  0x1b   : > { %1514 = vmatpush.bf16.msra.mxu2 %v1505_v7  ;;  %1515 = vmatpush.bf16.msra.mxu3 %v1505_v7  ;;  %v1489_v25 = vld [vmem:[%s1779_s11 + $0x98] sm:$0xff]  ;;  %v1490_v29 = vld [vmem:[%s1779_s11 + $0xa0] sm:$0xff]  ;;  %v1491_v33 = vld [vmem:[%s1779_s11 + $0xa8] sm:$0xff] }
  0x1c   : > { %v1497_v26 = vld [vmem:[%s1779_s11 + $0xd8] sm:$0xff]  ;;  %v1498_v30 = vld [vmem:[%s1779_s11 + $0xe0] sm:$0xff]  ;;  %v1499_v34 = vld [vmem:[%s1779_s11 + $0xe8] sm:$0xff] }
  0x1d   : > { %v1476_v35 = vld [vmem:[%s1779_s11 + $0x30] sm:$0xff]  ;;  %v1477_v39 = vld [vmem:[%s1779_s11 + $0x38] sm:$0xff] }
  0x1e   : > { %569 = vmatpush.bf16.msra.mxu0 %v1504_v8  ;;  %1516 = vmatpush.bf16.msra.mxu1 %v1504_v8  ;;  %v1484_v36 = vld [vmem:[%s1779_s11 + $0x70] sm:$0xff]  ;;  %v1485_v40 = vld [vmem:[%s1779_s11 + $0x78] sm:$0xff] }
  0x1f   : > { %1517 = vmatpush.bf16.msra.mxu2 %v1504_v8  ;;  %1518 = vmatpush.bf16.msra.mxu3 %v1504_v8  ;;  %v1492_v37 = vld [vmem:[%s1779_s11 + $0xb0] sm:$0xff]  ;;  %v1493_v41 = vld [vmem:[%s1779_s11 + $0xb8] sm:$0xff] }
  0x20   : > { %v1500_v38 = vld [vmem:[%s1779_s11 + $0xf0] sm:$0xff]  ;;  %v1501_v42 = vld [vmem:[%s1779_s11 + $0xf8] sm:$0xff] }
  0x22   : > { %570 = vmatpush.bf16.msra.mxu0 %v1503_v9  ;;  %1519 = vmatpush.bf16.msra.mxu1 %v1503_v9 }
  0x23   : > { %1520 = vmatpush.bf16.msra.mxu2 %v1503_v9  ;;  %1521 = vmatpush.bf16.msra.mxu3 %v1503_v9 }
  0x26   : > { %571 = vmatpush.bf16.msra.mxu0 %v1502_v10  ;;  %1522 = vmatpush.bf16.msra.mxu1 %v1502_v10 }
  0x27   : > { %1523 = vmatpush.bf16.msra.mxu2 %v1502_v10  ;;  %1524 = vmatpush.bf16.msra.mxu3 %v1502_v10 }
  0x29   : > { %1421 = vmatmul.msk.bf16.vlgmr.msra.gmra.mxu0 %vm460_vm2, %v1470_v11  ;;  %1429 = vmatmul.msk.bf16.vlgmr.msra.gmra.mxu1 %vm460_vm2, %v1478_v12 }
  0x2a   : > { %1437 = vmatmul.msk.bf16.vlgmr.msra.gmra.mxu2 %vm460_vm2, %v1486_v13  ;;  %1445 = vmatmul.msk.bf16.vlgmr.msra.gmra.mxu3 %vm460_vm2, %v1494_v14 }
  0x39   : > { %1422 = vmatmul.msk.bf16.gmra.mxu0 %vm460_vm2, %v1471_v15  ;;  %1430 = vmatmul.msk.bf16.gmra.mxu1 %vm460_vm2, %v1479_v16 }
  0x3a   : > { %1438 = vmatmul.msk.bf16.gmra.mxu2 %vm460_vm2, %v1487_v17  ;;  %1446 = vmatmul.msk.bf16.gmra.mxu3 %vm460_vm2, %v1495_v18 }
  0x49   : > { %1423 = vmatmul.msk.bf16.gmra.mxu0 %vm460_vm2, %v1472_v19  ;;  %1431 = vmatmul.msk.bf16.gmra.mxu1 %vm460_vm2, %v1480_v20 }
  0x4a   : > { %1439 = vmatmul.msk.bf16.gmra.mxu2 %vm460_vm2, %v1488_v21  ;;  %1447 = vmatmul.msk.bf16.gmra.mxu3 %vm460_vm2, %v1496_v22 }
  0x59   : > { %1424 = vmatmul.msk.bf16.gmra.mxu0 %vm460_vm2, %v1473_v23  ;;  %1432 = vmatmul.msk.bf16.gmra.mxu1 %vm460_vm2, %v1481_v24 }
  0x5a   : > { %1440 = vmatmul.msk.bf16.gmra.mxu2 %vm460_vm2, %v1489_v25  ;;  %1448 = vmatmul.msk.bf16.gmra.mxu3 %vm460_vm2, %v1497_v26 }
  0x69   : > { %1425 = vmatmul.msk.bf16.gmra.mxu0 %vm460_vm2, %v1474_v27  ;;  %1433 = vmatmul.msk.bf16.gmra.mxu1 %vm460_vm2, %v1482_v28 }
  0x6a   : > { %1441 = vmatmul.msk.bf16.gmra.mxu2 %vm460_vm2, %v1490_v29  ;;  %1449 = vmatmul.msk.bf16.gmra.mxu3 %vm460_vm2, %v1498_v30 }
  0x79   : > { %1426 = vmatmul.msk.bf16.gmra.mxu0 %vm460_vm2, %v1475_v31  ;;  %1434 = vmatmul.msk.bf16.gmra.mxu1 %vm460_vm2, %v1483_v32 }
  0x7a   : > { %1442 = vmatmul.msk.bf16.gmra.mxu2 %vm460_vm2, %v1491_v33  ;;  %1450 = vmatmul.msk.bf16.gmra.mxu3 %vm460_vm2, %v1499_v34 }
  0x89   : > { %1427 = vmatmul.msk.bf16.gmra.mxu0 %vm460_vm2, %v1476_v35  ;;  %1435 = vmatmul.msk.bf16.gmra.mxu1 %vm460_vm2, %v1484_v36 }
  0x8a   : > { %1443 = vmatmul.msk.bf16.gmra.mxu2 %vm460_vm2, %v1492_v37  ;;  %1451 = vmatmul.msk.bf16.gmra.mxu3 %vm460_vm2, %v1500_v38 }
  0x99   : > { %1428 = vmatmul.msk.bf16.gmra.mxu0 %vm460_vm2, %v1477_v39  ;;  %1436 = vmatmul.msk.bf16.gmra.mxu1 %vm460_vm2, %v1485_v40 }
  0x9a   : > { %1444 = vmatmul.msk.bf16.gmra.mxu2 %vm460_vm2, %v1493_v41  ;;  %1452 = vmatmul.msk.bf16.gmra.mxu3 %vm460_vm2, %v1501_v42 }
  0xa6   : > { %v573_v44 = vpop.f32.mrf.mxu0  ;;  %v613_v45 = vpop.f32.mrf.mxu1 }
  0xa7   : > { %v574_v46 = vadd.f32 %v1848_v43, %v573_v44  ;;  %v614_v47 = vadd.f32 %v1848_v43, %v613_v45 }
  0xa9   : > { %v733_v48 = vmax.f32 %v574_v46, 0.0  ;;  %v749_v49 = vmax.f32 %v614_v47, 0.0 }
  0xab   : > { %v797_v50 = vpack.c.bf16 %v733_v48, %v733_v48  ;;  %v813_v51 = vpack.c.bf16 %v749_v49, %v749_v49 }
  0xad   : > { %862 = vst.msk [vmem:[%s1853_s22] sm:$0xf] %vm861_vm3, %v797_v50  ;;  %v653_v52 = vpop.f32.mrf.mxu2  ;;  %v693_v53 = vpop.f32.mrf.mxu3 }
  0xae   : > { %878 = vst.msk [vmem:[%s1853_s22 + $0x40] sm:$0xf] %vm861_vm3, %v813_v51  ;;  %v654_v54 = vadd.f32 %v1848_v43, %v653_v52  ;;  %v694_v55 = vadd.f32 %v1848_v43, %v693_v53  ;;  %v575_v56 = vpop.f32.mrf.mxu0  ;;  %v615_v57 = vpop.f32.mrf.mxu1 }
  0xaf   : > { %v576_v58 = vadd.f32 %v1848_v43, %v575_v56  ;;  %v616_v59 = vadd.f32 %v1848_v43, %v615_v57 }
  0xb0   : > { %v765_v60 = vmax.f32 %v654_v54, 0.0  ;;  %v781_v61 = vmax.f32 %v694_v55, 0.0 }
  0xb1   : > { %v734_v62 = vmax.f32 %v576_v58, 0.0  ;;  %v750_v63 = vmax.f32 %v616_v59, 0.0 }
  0xb2   : > { %v829_v0 = vpack.c.bf16 %v765_v60, %v765_v60  ;;  %v845_v1 = vpack.c.bf16 %v781_v61, %v781_v61 }
  0xb3   : > { %v798_v2 = vpack.c.bf16 %v734_v62, %v734_v62  ;;  %v814_v3 = vpack.c.bf16 %v750_v63, %v750_v63 }
  0xb4   : > { %894 = vst.msk [vmem:[%s1853_s22 + $0x80] sm:$0xf] %vm861_vm3, %v829_v0 }
  0xb5   : > { %910 = vst.msk [vmem:[%s1853_s22 + $0xc0] sm:$0xf] %vm861_vm3, %v845_v1  ;;  %v655_v4 = vpop.f32.mrf.mxu2  ;;  %v695_v5 = vpop.f32.mrf.mxu3 }
  0xb6   : > { %863 = vst.msk [vmem:[%s1853_s22 + $0x4] sm:$0xf] %vm861_vm3, %v798_v2  ;;  %v656_v6 = vadd.f32 %v1848_v43, %v655_v4  ;;  %v696_v7 = vadd.f32 %v1848_v43, %v695_v5  ;;  %v578_v8 = vpop.f32.mrf.mxu0  ;;  %v618_v9 = vpop.f32.mrf.mxu1 }
  0xb7   : > { %879 = vst.msk [vmem:[%s1853_s22 + $0x44] sm:$0xf] %vm861_vm3, %v814_v3  ;;  %v579_v10 = vadd.f32 %v1848_v43, %v578_v8  ;;  %v619_v11 = vadd.f32 %v1848_v43, %v618_v9 }
  0xb8   : > { %v766_v12 = vmax.f32 %v656_v6, 0.0  ;;  %v782_v13 = vmax.f32 %v696_v7, 0.0 }
  0xb9   : > { %v735_v14 = vmax.f32 %v579_v10, 0.0  ;;  %v751_v15 = vmax.f32 %v619_v11, 0.0 }
  0xba   : > { %v830_v16 = vpack.c.bf16 %v766_v12, %v766_v12  ;;  %v846_v17 = vpack.c.bf16 %v782_v13, %v782_v13 }
  0xbb   : > { %v799_v18 = vpack.c.bf16 %v735_v14, %v735_v14  ;;  %v815_v19 = vpack.c.bf16 %v751_v15, %v751_v15 }
  0xbc   : > { %895 = vst.msk [vmem:[%s1853_s22 + $0x84] sm:$0xf] %vm861_vm3, %v830_v16 }
  0xbd   : > { %911 = vst.msk [vmem:[%s1853_s22 + $0xc4] sm:$0xf] %vm861_vm3, %v846_v17  ;;  %v658_v20 = vpop.f32.mrf.mxu2  ;;  %v698_v21 = vpop.f32.mrf.mxu3 }
  0xbe   : > { %864 = vst.msk [vmem:[%s1853_s22 + $0x8] sm:$0xf] %vm861_vm3, %v799_v18  ;;  %v659_v22 = vadd.f32 %v1848_v43, %v658_v20  ;;  %v699_v23 = vadd.f32 %v1848_v43, %v698_v21  ;;  %v580_v24 = vpop.f32.mrf.mxu0  ;;  %v620_v25 = vpop.f32.mrf.mxu1 }
  0xbf   : > { %880 = vst.msk [vmem:[%s1853_s22 + $0x48] sm:$0xf] %vm861_vm3, %v815_v19  ;;  %v581_v26 = vadd.f32 %v1848_v43, %v580_v24  ;;  %v621_v27 = vadd.f32 %v1848_v43, %v620_v25 }
  0xc0   : > { %v767_v28 = vmax.f32 %v659_v22, 0.0  ;;  %v783_v29 = vmax.f32 %v699_v23, 0.0 }
  0xc1   : > { %v736_v30 = vmax.f32 %v581_v26, 0.0  ;;  %v752_v31 = vmax.f32 %v621_v27, 0.0 }
  0xc2   : > { %v831_v32 = vpack.c.bf16 %v767_v28, %v767_v28  ;;  %v847_v33 = vpack.c.bf16 %v783_v29, %v783_v29 }
  0xc3   : > { %v800_v34 = vpack.c.bf16 %v736_v30, %v736_v30  ;;  %v816_v35 = vpack.c.bf16 %v752_v31, %v752_v31 }
  0xc4   : > { %896 = vst.msk [vmem:[%s1853_s22 + $0x88] sm:$0xf] %vm861_vm3, %v831_v32 }
  0xc5   : > { %912 = vst.msk [vmem:[%s1853_s22 + $0xc8] sm:$0xf] %vm861_vm3, %v847_v33  ;;  %v660_v36 = vpop.f32.mrf.mxu2  ;;  %v700_v37 = vpop.f32.mrf.mxu3 }
  0xc6   : > { %865 = vst.msk [vmem:[%s1853_s22 + $0xc] sm:$0xf] %vm861_vm3, %v800_v34  ;;  %v661_v38 = vadd.f32 %v1848_v43, %v660_v36  ;;  %v701_v39 = vadd.f32 %v1848_v43, %v700_v37  ;;  %v583_v40 = vpop.f32.mrf.mxu0  ;;  %v623_v41 = vpop.f32.mrf.mxu1 }
  0xc7   : > { %881 = vst.msk [vmem:[%s1853_s22 + $0x4c] sm:$0xf] %vm861_vm3, %v816_v35  ;;  %v584_v42 = vadd.f32 %v1848_v43, %v583_v40  ;;  %v624_v44 = vadd.f32 %v1848_v43, %v623_v41 }
  0xc8   : > { %v768_v45 = vmax.f32 %v661_v38, 0.0  ;;  %v784_v46 = vmax.f32 %v701_v39, 0.0 }
  0xc9   : > { %v737_v47 = vmax.f32 %v584_v42, 0.0  ;;  %v753_v48 = vmax.f32 %v624_v44, 0.0 }
  0xca   : > { %v832_v49 = vpack.c.bf16 %v768_v45, %v768_v45  ;;  %v848_v50 = vpack.c.bf16 %v784_v46, %v784_v46 }
  0xcb   : > { %v801_v51 = vpack.c.bf16 %v737_v47, %v737_v47  ;;  %v817_v52 = vpack.c.bf16 %v753_v48, %v753_v48 }
  0xcc   : > { %897 = vst.msk [vmem:[%s1853_s22 + $0x8c] sm:$0xf] %vm861_vm3, %v832_v49 }
  0xcd   : > { %913 = vst.msk [vmem:[%s1853_s22 + $0xcc] sm:$0xf] %vm861_vm3, %v848_v50  ;;  %v663_v53 = vpop.f32.mrf.mxu2  ;;  %v703_v54 = vpop.f32.mrf.mxu3 }
  0xce   : > { %866 = vst.msk [vmem:[%s1853_s22 + $0x10] sm:$0xf] %vm861_vm3, %v801_v51  ;;  %v664_v55 = vadd.f32 %v1848_v43, %v663_v53  ;;  %v704_v56 = vadd.f32 %v1848_v43, %v703_v54  ;;  %v585_v57 = vpop.f32.mrf.mxu0  ;;  %v625_v58 = vpop.f32.mrf.mxu1 }
  0xcf   : > { %882 = vst.msk [vmem:[%s1853_s22 + $0x50] sm:$0xf] %vm861_vm3, %v817_v52  ;;  %v586_v59 = vadd.f32 %v1848_v43, %v585_v57  ;;  %v626_v60 = vadd.f32 %v1848_v43, %v625_v58 }
  0xd0   : > { %v769_v61 = vmax.f32 %v664_v55, 0.0  ;;  %v785_v62 = vmax.f32 %v704_v56, 0.0 }
  0xd1   : > { %v738_v63 = vmax.f32 %v586_v59, 0.0  ;;  %v754_v0 = vmax.f32 %v626_v60, 0.0 }
  0xd2   : > { %v833_v1 = vpack.c.bf16 %v769_v61, %v769_v61  ;;  %v849_v2 = vpack.c.bf16 %v785_v62, %v785_v62 }
  0xd3   : > { %v802_v3 = vpack.c.bf16 %v738_v63, %v738_v63  ;;  %v818_v4 = vpack.c.bf16 %v754_v0, %v754_v0 }
  0xd4   : > { %898 = vst.msk [vmem:[%s1853_s22 + $0x90] sm:$0xf] %vm861_vm3, %v833_v1 }
  0xd5   : > { %914 = vst.msk [vmem:[%s1853_s22 + $0xd0] sm:$0xf] %vm861_vm3, %v849_v2  ;;  %v665_v5 = vpop.f32.mrf.mxu2  ;;  %v705_v6 = vpop.f32.mrf.mxu3 }
  0xd6   : > { %867 = vst.msk [vmem:[%s1853_s22 + $0x14] sm:$0xf] %vm861_vm3, %v802_v3  ;;  %v666_v7 = vadd.f32 %v1848_v43, %v665_v5  ;;  %v706_v8 = vadd.f32 %v1848_v43, %v705_v6  ;;  %v588_v9 = vpop.f32.mrf.mxu0  ;;  %v628_v10 = vpop.f32.mrf.mxu1 }
  0xd7   : > { %883 = vst.msk [vmem:[%s1853_s22 + $0x54] sm:$0xf] %vm861_vm3, %v818_v4  ;;  %v589_v11 = vadd.f32 %v1848_v43, %v588_v9  ;;  %v629_v12 = vadd.f32 %v1848_v43, %v628_v10 }
  0xd8   : > { %v770_v13 = vmax.f32 %v666_v7, 0.0  ;;  %v786_v14 = vmax.f32 %v706_v8, 0.0 }
  0xd9   : > { %v739_v15 = vmax.f32 %v589_v11, 0.0  ;;  %v755_v16 = vmax.f32 %v629_v12, 0.0 }
  0xda   : > { %v834_v17 = vpack.c.bf16 %v770_v13, %v770_v13  ;;  %v850_v18 = vpack.c.bf16 %v786_v14, %v786_v14 }
  0xdb   : > { %v803_v19 = vpack.c.bf16 %v739_v15, %v739_v15  ;;  %v819_v20 = vpack.c.bf16 %v755_v16, %v755_v16 }
  0xdc   : > { %899 = vst.msk [vmem:[%s1853_s22 + $0x94] sm:$0xf] %vm861_vm3, %v834_v17 }
  0xdd   : > { %915 = vst.msk [vmem:[%s1853_s22 + $0xd4] sm:$0xf] %vm861_vm3, %v850_v18  ;;  %v668_v21 = vpop.f32.mrf.mxu2  ;;  %v708_v22 = vpop.f32.mrf.mxu3 }
  0xde   : > { %868 = vst.msk [vmem:[%s1853_s22 + $0x18] sm:$0xf] %vm861_vm3, %v803_v19  ;;  %v669_v23 = vadd.f32 %v1848_v43, %v668_v21  ;;  %v709_v24 = vadd.f32 %v1848_v43, %v708_v22  ;;  %v590_v25 = vpop.f32.mrf.mxu0  ;;  %v630_v26 = vpop.f32.mrf.mxu1 }
  0xdf   : > { %884 = vst.msk [vmem:[%s1853_s22 + $0x58] sm:$0xf] %vm861_vm3, %v819_v20  ;;  %v591_v27 = vadd.f32 %v1848_v43, %v590_v25  ;;  %v631_v28 = vadd.f32 %v1848_v43, %v630_v26 }
  0xe0   : > { %v771_v29 = vmax.f32 %v669_v23, 0.0  ;;  %v787_v30 = vmax.f32 %v709_v24, 0.0 }
  0xe1   : > { %v740_v31 = vmax.f32 %v591_v27, 0.0  ;;  %v756_v32 = vmax.f32 %v631_v28, 0.0 }
  0xe2   : > { %v835_v33 = vpack.c.bf16 %v771_v29, %v771_v29  ;;  %v851_v34 = vpack.c.bf16 %v787_v30, %v787_v30 }
  0xe3   : > { %v804_v35 = vpack.c.bf16 %v740_v31, %v740_v31  ;;  %v820_v36 = vpack.c.bf16 %v756_v32, %v756_v32 }
  0xe4   : > { %900 = vst.msk [vmem:[%s1853_s22 + $0x98] sm:$0xf] %vm861_vm3, %v835_v33 }
  0xe5   : > { %916 = vst.msk [vmem:[%s1853_s22 + $0xd8] sm:$0xf] %vm861_vm3, %v851_v34  ;;  %v670_v37 = vpop.f32.mrf.mxu2  ;;  %v710_v38 = vpop.f32.mrf.mxu3 }
  0xe6   : > { %869 = vst.msk [vmem:[%s1853_s22 + $0x1c] sm:$0xf] %vm861_vm3, %v804_v35  ;;  %v671_v39 = vadd.f32 %v1848_v43, %v670_v37  ;;  %v711_v40 = vadd.f32 %v1848_v43, %v710_v38  ;;  %v593_v41 = vpop.f32.mrf.mxu0  ;;  %v633_v42 = vpop.f32.mrf.mxu1 }
  0xe7   : > { %885 = vst.msk [vmem:[%s1853_s22 + $0x5c] sm:$0xf] %vm861_vm3, %v820_v36  ;;  %v594_v44 = vadd.f32 %v1848_v43, %v593_v41  ;;  %v634_v45 = vadd.f32 %v1848_v43, %v633_v42 }
  0xe8   : > { %v772_v46 = vmax.f32 %v671_v39, 0.0  ;;  %v788_v47 = vmax.f32 %v711_v40, 0.0 }
  0xe9   : > { %v741_v48 = vmax.f32 %v594_v44, 0.0  ;;  %v757_v49 = vmax.f32 %v634_v45, 0.0 }
  0xea   : > { %v836_v50 = vpack.c.bf16 %v772_v46, %v772_v46  ;;  %v852_v51 = vpack.c.bf16 %v788_v47, %v788_v47 }
  0xeb   : > { %v805_v52 = vpack.c.bf16 %v741_v48, %v741_v48  ;;  %v821_v53 = vpack.c.bf16 %v757_v49, %v757_v49 }
  0xec   : > { %901 = vst.msk [vmem:[%s1853_s22 + $0x9c] sm:$0xf] %vm861_vm3, %v836_v50 }
  0xed   : > { %917 = vst.msk [vmem:[%s1853_s22 + $0xdc] sm:$0xf] %vm861_vm3, %v852_v51  ;;  %v673_v54 = vpop.f32.mrf.mxu2  ;;  %v713_v55 = vpop.f32.mrf.mxu3 }
  0xee   : > { %870 = vst.msk [vmem:[%s1853_s22 + $0x20] sm:$0xf] %vm861_vm3, %v805_v52  ;;  %v674_v56 = vadd.f32 %v1848_v43, %v673_v54  ;;  %v714_v57 = vadd.f32 %v1848_v43, %v713_v55  ;;  %v595_v58 = vpop.f32.mrf.mxu0  ;;  %v635_v59 = vpop.f32.mrf.mxu1 }
  0xef   : > { %886 = vst.msk [vmem:[%s1853_s22 + $0x60] sm:$0xf] %vm861_vm3, %v821_v53  ;;  %v596_v60 = vadd.f32 %v1848_v43, %v595_v58  ;;  %v636_v61 = vadd.f32 %v1848_v43, %v635_v59 }
  0xf0   : > { %v773_v62 = vmax.f32 %v674_v56, 0.0  ;;  %v789_v63 = vmax.f32 %v714_v57, 0.0 }
  0xf1   : > { %v742_v0 = vmax.f32 %v596_v60, 0.0  ;;  %v758_v1 = vmax.f32 %v636_v61, 0.0 }
  0xf2   : > { %v837_v2 = vpack.c.bf16 %v773_v62, %v773_v62  ;;  %v853_v3 = vpack.c.bf16 %v789_v63, %v789_v63 }
  0xf3   : > { %v806_v4 = vpack.c.bf16 %v742_v0, %v742_v0  ;;  %v822_v5 = vpack.c.bf16 %v758_v1, %v758_v1 }
  0xf4   : > { %902 = vst.msk [vmem:[%s1853_s22 + $0xa0] sm:$0xf] %vm861_vm3, %v837_v2 }
  0xf5   : > { %918 = vst.msk [vmem:[%s1853_s22 + $0xe0] sm:$0xf] %vm861_vm3, %v853_v3  ;;  %v675_v6 = vpop.f32.mrf.mxu2  ;;  %v715_v7 = vpop.f32.mrf.mxu3 }
  0xf6   : > { %871 = vst.msk [vmem:[%s1853_s22 + $0x24] sm:$0xf] %vm861_vm3, %v806_v4  ;;  %v676_v8 = vadd.f32 %v1848_v43, %v675_v6  ;;  %v716_v9 = vadd.f32 %v1848_v43, %v715_v7  ;;  %v598_v10 = vpop.f32.mrf.mxu0  ;;  %v638_v11 = vpop.f32.mrf.mxu1 }
  0xf7   : > { %887 = vst.msk [vmem:[%s1853_s22 + $0x64] sm:$0xf] %vm861_vm3, %v822_v5  ;;  %v599_v12 = vadd.f32 %v1848_v43, %v598_v10  ;;  %v639_v13 = vadd.f32 %v1848_v43, %v638_v11 }
  0xf8   : > { %v774_v14 = vmax.f32 %v676_v8, 0.0  ;;  %v790_v15 = vmax.f32 %v716_v9, 0.0 }
  0xf9   : > { %v743_v16 = vmax.f32 %v599_v12, 0.0  ;;  %v759_v17 = vmax.f32 %v639_v13, 0.0 }
  0xfa   : > { %v838_v18 = vpack.c.bf16 %v774_v14, %v774_v14  ;;  %v854_v19 = vpack.c.bf16 %v790_v15, %v790_v15 }
  0xfb   : > { %v807_v20 = vpack.c.bf16 %v743_v16, %v743_v16  ;;  %v823_v21 = vpack.c.bf16 %v759_v17, %v759_v17 }
  0xfc   : > { %903 = vst.msk [vmem:[%s1853_s22 + $0xa4] sm:$0xf] %vm861_vm3, %v838_v18 }
  0xfd   : > { %919 = vst.msk [vmem:[%s1853_s22 + $0xe4] sm:$0xf] %vm861_vm3, %v854_v19  ;;  %v678_v22 = vpop.f32.mrf.mxu2  ;;  %v718_v23 = vpop.f32.mrf.mxu3 }
  0xfe   : > { %872 = vst.msk [vmem:[%s1853_s22 + $0x28] sm:$0xf] %vm861_vm3, %v807_v20  ;;  %v679_v24 = vadd.f32 %v1848_v43, %v678_v22  ;;  %v719_v25 = vadd.f32 %v1848_v43, %v718_v23  ;;  %v600_v26 = vpop.f32.mrf.mxu0  ;;  %v640_v27 = vpop.f32.mrf.mxu1 }
  0xff   : > { %888 = vst.msk [vmem:[%s1853_s22 + $0x68] sm:$0xf] %vm861_vm3, %v823_v21  ;;  %v601_v28 = vadd.f32 %v1848_v43, %v600_v26  ;;  %v641_v29 = vadd.f32 %v1848_v43, %v640_v27 }
 0x100   : > { %v775_v30 = vmax.f32 %v679_v24, 0.0  ;;  %v791_v31 = vmax.f32 %v719_v25, 0.0 }
 0x101   : > { %v744_v32 = vmax.f32 %v601_v28, 0.0  ;;  %v760_v33 = vmax.f32 %v641_v29, 0.0 }
 0x102   : > { %v839_v34 = vpack.c.bf16 %v775_v30, %v775_v30  ;;  %v855_v35 = vpack.c.bf16 %v791_v31, %v791_v31 }
 0x103   : > { %v808_v36 = vpack.c.bf16 %v744_v32, %v744_v32  ;;  %v824_v37 = vpack.c.bf16 %v760_v33, %v760_v33 }
 0x104   : > { %904 = vst.msk [vmem:[%s1853_s22 + $0xa8] sm:$0xf] %vm861_vm3, %v839_v34 }
 0x105   : > { %920 = vst.msk [vmem:[%s1853_s22 + $0xe8] sm:$0xf] %vm861_vm3, %v855_v35  ;;  %v680_v38 = vpop.f32.mrf.mxu2  ;;  %v720_v39 = vpop.f32.mrf.mxu3 }
 0x106   : > { %873 = vst.msk [vmem:[%s1853_s22 + $0x2c] sm:$0xf] %vm861_vm3, %v808_v36  ;;  %v681_v40 = vadd.f32 %v1848_v43, %v680_v38  ;;  %v721_v41 = vadd.f32 %v1848_v43, %v720_v39  ;;  %v603_v42 = vpop.f32.mrf.mxu0  ;;  %v643_v44 = vpop.f32.mrf.mxu1 }
 0x107   : > { %889 = vst.msk [vmem:[%s1853_s22 + $0x6c] sm:$0xf] %vm861_vm3, %v824_v37  ;;  %v604_v45 = vadd.f32 %v1848_v43, %v603_v42  ;;  %v644_v46 = vadd.f32 %v1848_v43, %v643_v44 }
 0x108   : > { %v776_v47 = vmax.f32 %v681_v40, 0.0  ;;  %v792_v48 = vmax.f32 %v721_v41, 0.0 }
 0x109   : > { %v745_v49 = vmax.f32 %v604_v45, 0.0  ;;  %v761_v50 = vmax.f32 %v644_v46, 0.0 }
 0x10a   : > { %v840_v51 = vpack.c.bf16 %v776_v47, %v776_v47  ;;  %v856_v52 = vpack.c.bf16 %v792_v48, %v792_v48 }
 0x10b   : > { %v809_v53 = vpack.c.bf16 %v745_v49, %v745_v49  ;;  %v825_v54 = vpack.c.bf16 %v761_v50, %v761_v50 }
 0x10c   : > { %905 = vst.msk [vmem:[%s1853_s22 + $0xac] sm:$0xf] %vm861_vm3, %v840_v51 }
 0x10d   : > { %921 = vst.msk [vmem:[%s1853_s22 + $0xec] sm:$0xf] %vm861_vm3, %v856_v52  ;;  %v683_v55 = vpop.f32.mrf.mxu2  ;;  %v723_v56 = vpop.f32.mrf.mxu3 }
 0x10e   : > { %874 = vst.msk [vmem:[%s1853_s22 + $0x30] sm:$0xf] %vm861_vm3, %v809_v53  ;;  %v684_v57 = vadd.f32 %v1848_v43, %v683_v55  ;;  %v724_v58 = vadd.f32 %v1848_v43, %v723_v56  ;;  %v605_v59 = vpop.f32.mrf.mxu0  ;;  %v645_v60 = vpop.f32.mrf.mxu1 }
 0x10f   : > { %890 = vst.msk [vmem:[%s1853_s22 + $0x70] sm:$0xf] %vm861_vm3, %v825_v54  ;;  %v606_v61 = vadd.f32 %v1848_v43, %v605_v59  ;;  %v646_v62 = vadd.f32 %v1848_v43, %v645_v60 }
 0x110   : > { %v777_v63 = vmax.f32 %v684_v57, 0.0  ;;  %v793_v0 = vmax.f32 %v724_v58, 0.0 }
 0x111   : > { %v746_v1 = vmax.f32 %v606_v61, 0.0  ;;  %v762_v2 = vmax.f32 %v646_v62, 0.0 }
 0x112   : > { %v841_v3 = vpack.c.bf16 %v777_v63, %v777_v63  ;;  %v857_v4 = vpack.c.bf16 %v793_v0, %v793_v0 }
 0x113   : > { %v810_v5 = vpack.c.bf16 %v746_v1, %v746_v1  ;;  %v826_v6 = vpack.c.bf16 %v762_v2, %v762_v2 }
 0x114   : > { %906 = vst.msk [vmem:[%s1853_s22 + $0xb0] sm:$0xf] %vm861_vm3, %v841_v3 }
 0x115   : > { %922 = vst.msk [vmem:[%s1853_s22 + $0xf0] sm:$0xf] %vm861_vm3, %v857_v4  ;;  %v685_v7 = vpop.f32.mrf.mxu2  ;;  %v725_v8 = vpop.f32.mrf.mxu3 }
 0x116   : > { %875 = vst.msk [vmem:[%s1853_s22 + $0x34] sm:$0xf] %vm861_vm3, %v810_v5  ;;  %v686_v9 = vadd.f32 %v1848_v43, %v685_v7  ;;  %v726_v10 = vadd.f32 %v1848_v43, %v725_v8  ;;  %v608_v11 = vpop.f32.mrf.mxu0  ;;  %v648_v12 = vpop.f32.mrf.mxu1 }
 0x117   : > { %891 = vst.msk [vmem:[%s1853_s22 + $0x74] sm:$0xf] %vm861_vm3, %v826_v6  ;;  %v609_v13 = vadd.f32 %v1848_v43, %v608_v11  ;;  %v649_v14 = vadd.f32 %v1848_v43, %v648_v12 }
 0x118   : > { %v778_v15 = vmax.f32 %v686_v9, 0.0  ;;  %v794_v16 = vmax.f32 %v726_v10, 0.0 }
 0x119   : > { %v747_v17 = vmax.f32 %v609_v13, 0.0  ;;  %v763_v18 = vmax.f32 %v649_v14, 0.0 }
 0x11a   : > { %v842_v19 = vpack.c.bf16 %v778_v15, %v778_v15  ;;  %v858_v20 = vpack.c.bf16 %v794_v16, %v794_v16 }
 0x11b   : > { %v811_v21 = vpack.c.bf16 %v747_v17, %v747_v17  ;;  %v827_v22 = vpack.c.bf16 %v763_v18, %v763_v18 }
 0x11c   : > { %907 = vst.msk [vmem:[%s1853_s22 + $0xb4] sm:$0xf] %vm861_vm3, %v842_v19 }
 0x11d   : > { %923 = vst.msk [vmem:[%s1853_s22 + $0xf4] sm:$0xf] %vm861_vm3, %v858_v20  ;;  %v688_v23 = vpop.f32.mrf.mxu2  ;;  %v728_v24 = vpop.f32.mrf.mxu3 }
 0x11e   : > { %876 = vst.msk [vmem:[%s1853_s22 + $0x38] sm:$0xf] %vm861_vm3, %v811_v21  ;;  %v689_v25 = vadd.f32 %v1848_v43, %v688_v23  ;;  %v729_v26 = vadd.f32 %v1848_v43, %v728_v24  ;;  %v610_v27 = vpop.f32.mrf.mxu0  ;;  %v650_v28 = vpop.f32.mrf.mxu1 }
 0x11f   : > { %892 = vst.msk [vmem:[%s1853_s22 + $0x78] sm:$0xf] %vm861_vm3, %v827_v22  ;;  %v611_v29 = vadd.f32 %v1848_v43, %v610_v27  ;;  %v651_v30 = vadd.f32 %v1848_v43, %v650_v28 }
 0x120   : > { %v779_v31 = vmax.f32 %v689_v25, 0.0  ;;  %v795_v32 = vmax.f32 %v729_v26, 0.0 }
 0x121   : > { %v748_v33 = vmax.f32 %v611_v29, 0.0  ;;  %v764_v34 = vmax.f32 %v651_v30, 0.0 }
 0x122   : > { %v843_v35 = vpack.c.bf16 %v779_v31, %v779_v31  ;;  %v859_v36 = vpack.c.bf16 %v795_v32, %v795_v32 }
 0x123   : > { %v812_v37 = vpack.c.bf16 %v748_v33, %v748_v33  ;;  %v828_v38 = vpack.c.bf16 %v764_v34, %v764_v34 }
 0x124   : > { %908 = vst.msk [vmem:[%s1853_s22 + $0xb8] sm:$0xf] %vm861_vm3, %v843_v35 }
 0x125   : > { %924 = vst.msk [vmem:[%s1853_s22 + $0xf8] sm:$0xf] %vm861_vm3, %v859_v36  ;;  %v690_v39 = vpop.f32.mrf.mxu2  ;;  %v730_v40 = vpop.f32.mrf.mxu3 }
 0x126   : > { %877 = vst.msk [vmem:[%s1853_s22 + $0x3c] sm:$0xf] %vm861_vm3, %v812_v37  ;;  %v691_v41 = vadd.f32 %v1848_v43, %v690_v39  ;;  %v731_v42 = vadd.f32 %v1848_v43, %v730_v40 }
 0x127   : > { %893 = vst.msk [vmem:[%s1853_s22 + $0x7c] sm:$0xf] %vm861_vm3, %v828_v38 }
 0x128   : > { %v780_v44 = vmax.f32 %v691_v41, 0.0  ;;  %v796_v45 = vmax.f32 %v731_v42, 0.0 }
 0x129   : > { %932 = sbr.rel (!%p1749_p4) target bundleno = 366 (0x16e), region = 36 }
 0x12a   : > { %v844_v46 = vpack.c.bf16 %v780_v44, %v780_v44  ;;  %v860_v47 = vpack.c.bf16 %v796_v45, %v796_v45 }
 0x12c   : > { %909 = vst.msk [vmem:[%s1853_s22 + $0xbc] sm:$0xf] %vm861_vm3, %v844_v46 }
 0x12d   : > { %925 = vst.msk [vmem:[%s1853_s22 + $0xfc] sm:$0xf] %vm861_vm3, %v860_v47 }
 0x12e   : > { %s2201_s12 = smov (!%p935_p8, %s934_s12), 64 }
 0x12f   : > { %s1455_s28 = sshll.u32 %s2201_s12, 2 }
 0x130   : > { %p1458_p9 = scmp.eq.s32.totalorder %s1455_s28, 0 }
 0x131   : > { %s2058_s29 = sshrl.u32 (!%p1458_p9), %s2201_s12, 5 }
 0x132   : > { %943 = sbr.rel (%p1458_p9) target bundleno = 366 (0x16e), region = 40  ;;  %p1459_p10 = scmp.le.s32.totalorder (!%p1458_p9), %s2058_s29, 0 }
 0x137   : > { %1222 = sbr.rel (%p1459_p10) target bundleno = 349 (0x15d), region = 112  ;;  %s2192_s15 = smov (!%p1459_p10), %s2052_s27 }
 0x138   : > { %s2193_s20 = smov (!%p1459_p10), %s1853_s22  ;;  %s2067_s25 = smov (!%p1459_p10), 0  }
 0x139   : > { %s2069_s30 = smov (!%p1459_p10), 0  }
 0x13c LB: >> { %v960_v43 = vld [vmem:[%s1677_s20] sm:$0xf]  ;;  %v962_v48 = vld [vmem:[%s1677_s20 + $0x4] sm:$0xf]  ;;  %v964_v49 = vld [vmem:[%s1677_s20 + $0x8] sm:$0xf]  ;;  %s1685_s30 = sphi %s2069_s30, %s954_s30   ;;  %s1681_s25 = sphi %s2067_s25, %s2196_s25   ;;  %s1677_s20 = sphi %s2193_s20, %s2195_s20   ;;  %s1673_s15 = sphi %s2192_s15, %s2194_s15  }
 0x13d   : >> { %961 = vst [vmem:[%s1673_s15] sm:$0xf] %v960_v43  ;;  %v966_v50 = vld [vmem:[%s1677_s20 + $0xc] sm:$0xf]  ;;  %v968_v51 = vld [vmem:[%s1677_s20 + $0x10] sm:$0xf]  ;;  %s1024_s4 = sadd.s32 1, %s1681_s25 }
 0x13e   : >> { %963 = vst [vmem:[%s1673_s15 + $0x4] sm:$0xf] %v962_v48  ;;  %v970_v52 = vld [vmem:[%s1677_s20 + $0x14] sm:$0xf]  ;;  %v972_v53 = vld [vmem:[%s1677_s20 + $0x18] sm:$0xf]  ;;  %p1025_p11 = scmp.ge.s32.totalorder %s1024_s4, %s2058_s29 }
 0x13f   : >> { %965 = vst [vmem:[%s1673_s15 + $0x8] sm:$0xf] %v964_v49  ;;  %v974_v54 = vld [vmem:[%s1677_s20 + $0x1c] sm:$0xf]  ;;  %v976_v55 = vld [vmem:[%s1677_s20 + $0x20] sm:$0xf] }
 0x140   : >> { %967 = vst [vmem:[%s1673_s15 + $0xc] sm:$0xf] %v966_v50  ;;  %v978_v56 = vld [vmem:[%s1677_s20 + $0x24] sm:$0xf]  ;;  %v980_v57 = vld [vmem:[%s1677_s20 + $0x28] sm:$0xf] }
 0x141   : >> { %969 = vst [vmem:[%s1673_s15 + $0x10] sm:$0xf] %v968_v51  ;;  %v982_v58 = vld [vmem:[%s1677_s20 + $0x2c] sm:$0xf]  ;;  %v984_v59 = vld [vmem:[%s1677_s20 + $0x30] sm:$0xf] }
 0x142   : >> { %971 = vst [vmem:[%s1673_s15 + $0x14] sm:$0xf] %v970_v52  ;;  %v986_v60 = vld [vmem:[%s1677_s20 + $0x34] sm:$0xf]  ;;  %v988_v61 = vld [vmem:[%s1677_s20 + $0x38] sm:$0xf] }
 0x143   : >> { %973 = vst [vmem:[%s1673_s15 + $0x18] sm:$0xf] %v972_v53  ;;  %v990_v62 = vld [vmem:[%s1677_s20 + $0x3c] sm:$0xf]  ;;  %v992_v63 = vld [vmem:[%s1677_s20 + $0x40] sm:$0xf] }
 0x144   : >> { %975 = vst [vmem:[%s1673_s15 + $0x1c] sm:$0xf] %v974_v54  ;;  %v994_v0 = vld [vmem:[%s1677_s20 + $0x44] sm:$0xf]  ;;  %s2203_s4 = smov (%p1025_p11, %s1024_s4), 0  ;;  %s954_s30 = sadd.s32 1, %s1685_s30  }
 0x145   : >> { %977 = vst [vmem:[%s1673_s15 + $0x20] sm:$0xf] %v976_v55  ;;  %v996_v1 = vld [vmem:[%s1677_s20 + $0x48] sm:$0xf]  ;;  %v998_v2 = vld [vmem:[%s1677_s20 + $0x4c] sm:$0xf]  ;;  %p953_p12 = scmp.ge.s32.totalorder %s954_s30, %s2058_s29  ;;  %s2196_s25 = smov %s2203_s4 }
 0x146   : >> { %979 = vst [vmem:[%s1673_s15 + $0x24] sm:$0xf] %v978_v56  ;;  %s1460_s5 = sshll.u32 %s2203_s4, 7  ;;  %v1000_v3 = vld [vmem:[%s1677_s20 + $0x50] sm:$0xf] }
 0x147   : >> { %981 = vst [vmem:[%s1673_s15 + $0x28] sm:$0xf] %v980_v57  ;;  %s2128_s6 = scalar_lea.vmem %s1853_s22, %s1460_s5 [#allocation2]   ;;  %s1030_s7 = scalar_lea.vmem %s2052_s27, %s1460_s5   ;;  %v1002_v4 = vld [vmem:[%s1677_s20 + $0x54] sm:$0xf]  ;;  %v1004_v5 = vld [vmem:[%s1677_s20 + $0x58] sm:$0xf] }
 0x148   : >> { %983 = vst [vmem:[%s1673_s15 + $0x2c] sm:$0xf] %v982_v58  ;;  %v1006_v6 = vld [vmem:[%s1677_s20 + $0x5c] sm:$0xf]  ;;  %v1008_v7 = vld [vmem:[%s1677_s20 + $0x60] sm:$0xf] }
 0x149   : >> { %985 = vst [vmem:[%s1673_s15 + $0x30] sm:$0xf] %v984_v59  ;;  %v1010_v8 = vld [vmem:[%s1677_s20 + $0x64] sm:$0xf]  ;;  %v1012_v9 = vld [vmem:[%s1677_s20 + $0x68] sm:$0xf] }
 0x14a   : >> { %987 = vst [vmem:[%s1673_s15 + $0x34] sm:$0xf] %v986_v60  ;;  %v1014_v10 = vld [vmem:[%s1677_s20 + $0x6c] sm:$0xf]  ;;  %v1016_v11 = vld [vmem:[%s1677_s20 + $0x70] sm:$0xf] }
 0x14b   : >> { %989 = vst [vmem:[%s1673_s15 + $0x38] sm:$0xf] %v988_v61  ;;  %v1018_v12 = vld [vmem:[%s1677_s20 + $0x74] sm:$0xf]  ;;  %v1020_v13 = vld [vmem:[%s1677_s20 + $0x78] sm:$0xf] }
 0x14c   : >> { %991 = vst [vmem:[%s1673_s15 + $0x3c] sm:$0xf] %v990_v62  ;;  %v1022_v14 = vld [vmem:[%s1677_s20 + $0x7c] sm:$0xf]  ;;  %s2195_s20 = smov %s2128_s6 }
 0x14d   : >> { %993 = vst [vmem:[%s1673_s15 + $0x40] sm:$0xf] %v992_v63 }
 0x14e   : >> { %995 = vst [vmem:[%s1673_s15 + $0x44] sm:$0xf] %v994_v0 }
 0x14f   : >> { %997 = vst [vmem:[%s1673_s15 + $0x48] sm:$0xf] %v996_v1 }
 0x150   : >> { %999 = vst [vmem:[%s1673_s15 + $0x4c] sm:$0xf] %v998_v2 }
 0x151   : >> { %1001 = vst [vmem:[%s1673_s15 + $0x50] sm:$0xf] %v1000_v3 }
 0x152   : >> { %1003 = vst [vmem:[%s1673_s15 + $0x54] sm:$0xf] %v1002_v4 }
 0x153   : >> { %1005 = vst [vmem:[%s1673_s15 + $0x58] sm:$0xf] %v1004_v5 }
 0x154   : >> { %1007 = vst [vmem:[%s1673_s15 + $0x5c] sm:$0xf] %v1006_v6 }
 0x155   : >> { %1009 = vst [vmem:[%s1673_s15 + $0x60] sm:$0xf] %v1008_v7 }
 0x156   : >> { %1011 = vst [vmem:[%s1673_s15 + $0x64] sm:$0xf] %v1010_v8 }
 0x157   : >> { %1013 = vst [vmem:[%s1673_s15 + $0x68] sm:$0xf] %v1012_v9 }
 0x158   : >> { %1015 = vst [vmem:[%s1673_s15 + $0x6c] sm:$0xf] %v1014_v10  ;;  %956 = sbr.rel (!%p953_p12) target bundleno = 316 (0x13c), region = 118 }
 0x159   : >> { %1017 = vst [vmem:[%s1673_s15 + $0x70] sm:$0xf] %v1016_v11 }
 0x15a   : >> { %1019 = vst [vmem:[%s1673_s15 + $0x74] sm:$0xf] %v1018_v12 }
 0x15b   : >> { %1021 = vst [vmem:[%s1673_s15 + $0x78] sm:$0xf] %v1020_v13 }
 0x15c   : >> { %1023 = vst [vmem:[%s1673_s15 + $0x7c] sm:$0xf] %v1022_v14  ;;  %s2194_s15 = smov %s1030_s7 }
 0x15d PF: > { %s2169_s8 = sand.u32 31, %s2201_s12   ;;  %s1508_s9 = sshll.u32 %s2058_s29, 7 }
 0x15e   : > { %s1035_s10 = scalar_lea.vmem %s1853_s22, %s1508_s9 [#allocation2]   ;;  %s1037_s11 = scalar_lea.vmem %s2052_s27, %s1508_s9  }
 0x15f   : > { %p1465_p13 = scmp.le.s32.totalorder %s2169_s8, 0 }
 0x160   : > { %s1687_s14 = smov (!%p1465_p13), %s1037_s11   ;;  %s1691_s17 = smov (!%p1465_p13), %s1035_s10  }
 0x161   : > { %1236 = sbr.rel (%p1465_p13) target bundleno = 366 (0x16e), region = 123  ;;  %s1695_s18 = smov (!%p1465_p13), 0  }
 0x162   : > { %s1699_s21 = smov (!%p1465_p13), 0  }
 0x166 LB: >> { %v1047_v15 = vld [vmem:[%s1693_s17] sm:$0xf]  ;;  %s1049_s12 = sadd.s32 1, %s1697_s18  ;;  %s1041_s21 = sadd.s32 1, %s1701_s21   ;;  %s1701_s21 = sphi %s1699_s21, %s1041_s21   ;;  %s1697_s18 = sphi %s1695_s18, %s1696_s18   ;;  %s1693_s17 = sphi %s1691_s17, %s1054_s17   ;;  %s1689_s14 = sphi %s1687_s14, %s1055_s14  }
 0x167   : >> { %1048 = vst [vmem:[%s1689_s14] sm:$0xf] %v1047_v15  ;;  %p1050_p0 = scmp.ge.s32.totalorder %s1049_s12, %s2169_s8  ;;  %p1040_p1 = scmp.ge.s32.totalorder %s1041_s21, %s2169_s8 }
 0x169   : >> { %s2205_s12 = smov (%p1050_p0, %s1049_s12), 0  ;;  %1043 = sbr.rel (!%p1040_p1) target bundleno = 358 (0x166), region = 129 }
 0x16a   : >> { %s1466_s22 = sshll.u32 %s2205_s12, 2  ;;  %s1696_s18 = smov %s2205_s12  }
 0x16b   : >> { %s1054_s17 = scalar_lea.vmem %s1035_s10, %s1466_s22 [#allocation2]   ;;  %s1055_s14 = scalar_lea.vmem %s1037_s11, %s1466_s22  }
 0x16e PF: > { %p10_p2 = scmp.ge.s32.totalorder %s1739_s16, 4   ;;  %s2197_s12 = smov %s1665_s13 }
 0x16f   : > { %s2198_s13 = smov %s1747_s19  ;;  %s2199_s14 = smov %s1739_s16 }
 0x170   :  { %12 = sbr.rel (!%p10_p2) target bundleno = 2 (0x2), region = 140 }

// kernel: dqn_forward.4
= control target key start
LH: loop header
LB: loop body
LE: loop exit
PB: predicated region body
PF: predicated region fallthrough
CT: control target
= control target key end

     0   :  { %vm372_vm0 = vcmask 130048   ;;  %vm592_vm1 = vcmask 257024   ;;  %vm605_vm2 = vcmask 253952   ;;  %s1185_s1 = inlined_call_operand.vmem [shape: bf16[400,32], index: 1, kind: input, shape index: {}]   ;;  %s1186_s0 = inlined_call_operand.vmem [shape: bf16[98,400], index: 0, kind: input, shape index: {}]   ;;  %s1187_s2 = inlined_call_operand.vmem [shape: f32[1,32], index: 2, kind: input, shape index: {}]   ;;  %s1188_s3 = inlined_call_operand.vmem [shape: bf16[98,32], index: 3, kind: output, shape index: {}]  }
   0x1   :  { %v845_v0 = vld [vmem:[%s1185_s1 + $0x38] sm:$0xff]  ;;  %v844_v3 = vld [vmem:[%s1185_s1 + $0x30] sm:$0xff]  ;;  %v843_v6 = vld [vmem:[%s1185_s1 + $0x28] sm:$0xff] }
   0x2   :  { %v853_v1 = vld [vmem:[%s1185_s1 + $0x78] sm:$0xff]  ;;  %394 = vmatpush.bf16.msra.mxu0 %v845_v0  ;;  %v852_v4 = vld [vmem:[%s1185_s1 + $0x70] sm:$0xff]  ;;  %v851_v7 = vld [vmem:[%s1185_s1 + $0x68] sm:$0xff] }
   0x3   :  { %v861_v2 = vld [vmem:[%s1185_s1 + $0xb8] sm:$0xff]  ;;  %437 = vmatpush.bf16.msra.mxu1 %v853_v1  ;;  %v860_v5 = vld [vmem:[%s1185_s1 + $0xb0] sm:$0xff]  ;;  %v862_v8 = vld [vmem:[%s1185_s1 + $0xc0] sm:$0xff] }
   0x4   :  { %480 = vmatpush.bf16.msra.mxu2 %v861_v2  ;;  %v859_v9 = vld [vmem:[%s1185_s1 + $0xa8] sm:$0xff]  ;;  %v623_v11 = vld [vmem:[%s1186_s0 + $0x18] sm:$0xf0]  ;;  %530 = vmatpush.bf16.msra.mxu3 %v862_v8  ;;  %v842_v13 = vld [vmem:[%s1185_s1 + $0x20] sm:$0xff] }
   0x5   :  { %v815_v10 = vld [vmem:[%s1186_s0 + $0xc] sm:$0xf]  ;;  %v850_v14 = vld [vmem:[%s1185_s1 + $0x60] sm:$0xff]  ;;  %v841_v16 = vld [vmem:[%s1185_s1 + $0x18] sm:$0xff] }
   0x6   :  { %395 = vmatpush.bf16.msra.mxu0 %v844_v3  ;;  %v626_v12 = vor.u32 %v815_v10, %v623_v11  ;;  %v858_v15 = vld [vmem:[%s1185_s1 + $0xa0] sm:$0xff]  ;;  %v849_v17 = vld [vmem:[%s1185_s1 + $0x58] sm:$0xff]  ;;  %v840_v19 = vld [vmem:[%s1185_s1 + $0x10] sm:$0xff] }
   0x7   :  { %438 = vmatpush.bf16.msra.mxu1 %v852_v4  ;;  %v857_v18 = vld [vmem:[%s1185_s1 + $0x98] sm:$0xff]  ;;  %v848_v20 = vld [vmem:[%s1185_s1 + $0x50] sm:$0xff]  ;;  %v819_v22 = vld [vmem:[%s1186_s0 + $0x2c] sm:$0xf] }
   0x8   :  { %481 = vmatpush.bf16.msra.mxu2 %v860_v5  ;;  %807 = vmatmul.msk.bf16.vlgmr.msra.gmra.mxu3 %vm372_vm0, %v626_v12  ;;  %v856_v21 = vld [vmem:[%s1185_s1 + $0x90] sm:$0xff]  ;;  %v639_v23 = vld [vmem:[%s1186_s0 + $0x38] sm:$0xf0]  ;;  %v839_v24 = vld [vmem:[%s1185_s1 + $0x8] sm:$0xff] }
   0x9   :  { %v847_v25 = vld [vmem:[%s1185_s1 + $0x48] sm:$0xff]  ;;  %v642_v27 = vor.u32 %v819_v22, %v639_v23  ;;  %v838_v28 = vld [vmem:[%s1185_s1] sm:$0xff]  ;;  %v816_v31 = vld [vmem:[%s1186_s0 + $0xc] sm:$0xf0] }
   0xa   :  { %396 = vmatpush.bf16.msra.mxu0 %v843_v6  ;;  %v855_v26 = vld [vmem:[%s1185_s1 + $0x88] sm:$0xff]  ;;  %v846_v29 = vld [vmem:[%s1185_s1 + $0x40] sm:$0xff]  ;;  %v615_v33 = vld [vmem:[%s1186_s0 + $0x10] sm:$0xf0] }
   0xb   :  { %439 = vmatpush.bf16.msra.mxu1 %v851_v7  ;;  %v613_v30 = vld [vmem:[%s1186_s0] sm:$0xf]  ;;  %v814_v32 = vld [vmem:[%s1186_s0 + $0x4] sm:$0xf]  ;;  %v621_v35 = vld [vmem:[%s1186_s0 + $0x8] sm:$0xf] }
   0xc   :  { %482 = vmatpush.bf16.msra.mxu2 %v859_v9  ;;  %v854_v34 = vld [vmem:[%s1185_s1 + $0x80] sm:$0xff]  ;;  %v817_v36 = vld [vmem:[%s1186_s0 + $0x14] sm:$0xf0]  ;;  %v614_v37 = vor.u32 %v816_v31, %v613_v30  ;;  %v618_v38 = vor.u32 %v814_v32, %v615_v33  ;;  %v823_v40 = vld [vmem:[%s1186_s0 + $0x4c] sm:$0xf] }
   0xd   :  { %v622_v39 = vor.u32 %v817_v36, %v621_v35  ;;  %v655_v41 = vld [vmem:[%s1186_s0 + $0x58] sm:$0xf0]  ;;  %v629_v43 = vld [vmem:[%s1186_s0 + $0x20] sm:$0xf]  ;;  %v820_v44 = vld [vmem:[%s1186_s0 + $0x2c] sm:$0xf0] }
   0xe   :  { %397 = vmatpush.bf16.msra.mxu0 %v842_v13  ;;  %v658_v42 = vor.u32 %v823_v40, %v655_v41  ;;  %v818_v45 = vld [vmem:[%s1186_s0 + $0x24] sm:$0xf]  ;;  %v631_v46 = vld [vmem:[%s1186_s0 + $0x30] sm:$0xf0]  ;;  %v637_v47 = vld [vmem:[%s1186_s0 + $0x28] sm:$0xf]  ;;  %v630_v49 = vor.u32 %v820_v44, %v629_v43 }
   0xf   :  { %440 = vmatpush.bf16.msra.mxu1 %v850_v14  ;;  %v821_v48 = vld [vmem:[%s1186_s0 + $0x34] sm:$0xf0]  ;;  %v634_v50 = vor.u32 %v818_v45, %v631_v46  ;;  %v827_v52 = vld [vmem:[%s1186_s0 + $0x6c] sm:$0xf]  ;;  %v671_v53 = vld [vmem:[%s1186_s0 + $0x78] sm:$0xf0] }
  0x10   :  { %483 = vmatpush.bf16.msra.mxu2 %v858_v15  ;;  %v638_v51 = vor.u32 %v821_v48, %v637_v47  ;;  %v674_v54 = vor.u32 %v827_v52, %v671_v53  ;;  %v645_v55 = vld [vmem:[%s1186_s0 + $0x40] sm:$0xf]  ;;  %v824_v56 = vld [vmem:[%s1186_s0 + $0x4c] sm:$0xf0]  ;;  %v822_v57 = vld [vmem:[%s1186_s0 + $0x44] sm:$0xf] }
  0x11   :  { %v647_v58 = vld [vmem:[%s1186_s0 + $0x50] sm:$0xf0]  ;;  %v653_v59 = vld [vmem:[%s1186_s0 + $0x48] sm:$0xf]  ;;  %v825_v60 = vld [vmem:[%s1186_s0 + $0x54] sm:$0xf0]  ;;  %v646_v61 = vor.u32 %v824_v56, %v645_v55 }
  0x12   :  { %398 = vmatpush.bf16.msra.mxu0 %v841_v16  ;;  %v650_v62 = vor.u32 %v822_v57, %v647_v58  ;;  %v654_v63 = vor.u32 %v825_v60, %v653_v59  ;;  %v831_v0 = vld [vmem:[%s1186_s0 + $0x8c] sm:$0xf]  ;;  %v687_v1 = vld [vmem:[%s1186_s0 + $0x98] sm:$0xf0]  ;;  %v661_v3 = vld [vmem:[%s1186_s0 + $0x60] sm:$0xf] }
  0x13   :  { %441 = vmatpush.bf16.msra.mxu1 %v849_v17  ;;  %v690_v2 = vor.u32 %v831_v0, %v687_v1  ;;  %v828_v4 = vld [vmem:[%s1186_s0 + $0x6c] sm:$0xf0]  ;;  %v826_v5 = vld [vmem:[%s1186_s0 + $0x64] sm:$0xf]  ;;  %v663_v6 = vld [vmem:[%s1186_s0 + $0x70] sm:$0xf0] }
  0x14   :  { %484 = vmatpush.bf16.msra.mxu2 %v857_v18  ;;  %v669_v7 = vld [vmem:[%s1186_s0 + $0x68] sm:$0xf]  ;;  %v829_v8 = vld [vmem:[%s1186_s0 + $0x74] sm:$0xf0]  ;;  %v662_v9 = vor.u32 %v828_v4, %v661_v3  ;;  %v666_v10 = vor.u32 %v826_v5, %v663_v6  ;;  %v835_v12 = vld [vmem:[%s1186_s0 + $0xac] sm:$0xf] }
  0x15   :  { %v670_v11 = vor.u32 %v829_v8, %v669_v7  ;;  %v703_v13 = vld [vmem:[%s1186_s0 + $0xb8] sm:$0xf0]  ;;  %v677_v15 = vld [vmem:[%s1186_s0 + $0x80] sm:$0xf]  ;;  %v832_v16 = vld [vmem:[%s1186_s0 + $0x8c] sm:$0xf0] }
  0x16   :  { %399 = vmatpush.bf16.msra.mxu0 %v840_v19  ;;  %v706_v14 = vor.u32 %v835_v12, %v703_v13  ;;  %v830_v17 = vld [vmem:[%s1186_s0 + $0x84] sm:$0xf]  ;;  %v679_v18 = vld [vmem:[%s1186_s0 + $0x90] sm:$0xf0]  ;;  %v685_v19 = vld [vmem:[%s1186_s0 + $0x88] sm:$0xf] }
  0x17   :  { %442 = vmatpush.bf16.msra.mxu1 %v848_v20  ;;  %v833_v20 = vld [vmem:[%s1186_s0 + $0x94] sm:$0xf0]  ;;  %v682_v22 = vor.u32 %v830_v17, %v679_v18  ;;  %v695_v30 = vld [vmem:[%s1186_s0 + $0xb0] sm:$0xf0]  ;;  %v701_v31 = vld [vmem:[%s1186_s0 + $0xa8] sm:$0xf] }
  0x18   :  { %485 = vmatpush.bf16.msra.mxu2 %v856_v21  ;;  %808 = vmatmul.msk.bf16.gmra.mxu3 %vm372_vm0, %v642_v27  ;;  %v678_v21 = vor.u32 %v832_v16, %v677_v15  ;;  %v686_v23 = vor.u32 %v833_v20, %v685_v19  ;;  %v693_v27 = vld [vmem:[%s1186_s0 + $0xa0] sm:$0xf]  ;;  %v837_v32 = vld [vmem:[%s1186_s0 + $0xb4] sm:$0xf0] }
  0x19   :  { %v702_v35 = vor.u32 %v837_v32, %v701_v31  ;;  %v39_v36 = vld [vmem:[%s1186_s0 + $0xc0] sm:$0x11] }
  0x1a   :  { %400 = vmatpush.bf16.msra.mxu0 %v839_v24  ;;  %v40_v24 = vld [vmem:[%s1186_s0 + $0xc8] sm:$0x11]  ;;  %v1119_v45 = vld [vmem:[%s1187_s2] ss:$0 sm:$0xff] }
  0x1b   :  { %443 = vmatpush.bf16.msra.mxu1 %v847_v25  ;;  %v172_v25 = vunpack.c.h.b16 %v40_v24 }
  0x1c   :  { %486 = vmatpush.bf16.msra.mxu2 %v855_v26 }
  0x1d   :  { %v200_v26 = vpack.c.b16 %v172_v25, %v172_v25 }
  0x1e   :  { %401 = vmatpush.bf16.msra.mxu0 %v838_v28  ;;  %v836_v28 = vld [vmem:[%s1186_s0 + $0xac] sm:$0xf0] }
  0x1f   :  { %444 = vmatpush.bf16.msra.mxu1 %v846_v29  ;;  %v834_v29 = vld [vmem:[%s1186_s0 + $0xa4] sm:$0xf]  ;;  %v694_v33 = vor.u32 %v836_v28, %v693_v27 }
  0x20   :  { %487 = vmatpush.bf16.msra.mxu2 %v854_v34  ;;  %v698_v34 = vor.u32 %v834_v29, %v695_v30 }
  0x21   :  { %402 = vmatmul.bf16.vlgmr.msra.gmra.mxu0 %v614_v37  ;;  %v169_v37 = vunpack.c.l.b16 %v39_v36 }
  0x22   :  { %445 = vmatmul.bf16.vlgmr.msra.gmra.mxu1 %v618_v38  ;;  %v170_v38 = vunpack.c.h.b16 %v39_v36 }
  0x23   :  { %488 = vmatmul.bf16.vlgmr.msra.gmra.mxu2 %v622_v39  ;;  %v171_v39 = vunpack.c.l.b16 %v40_v24  ;;  %v197_v40 = vpack.c.b16 %v169_v37, %v169_v37 }
  0x24   :  { %v198_v41 = vpack.c.b16 %v170_v38, %v170_v38 }
  0x28   :  { %809 = vmatmul.msk.bf16.gmra.mxu3 %vm372_vm0, %v658_v42  ;;  %v199_v42 = vpack.c.b16 %v171_v39, %v171_v39 }
  0x31   :  { %407 = vmatmul.bf16.gmra.mxu0 %v630_v49 }
  0x32   :  { %450 = vmatmul.bf16.gmra.mxu1 %v634_v50 }
  0x33   :  { %493 = vmatmul.bf16.gmra.mxu2 %v638_v51 }
  0x38   :  { %810 = vmatmul.msk.bf16.gmra.mxu3 %vm372_vm0, %v674_v54 }
  0x41   :  { %412 = vmatmul.bf16.gmra.mxu0 %v646_v61 }
  0x42   :  { %455 = vmatmul.bf16.gmra.mxu1 %v650_v62 }
  0x43   :  { %498 = vmatmul.bf16.gmra.mxu2 %v654_v63 }
  0x48   :  { %811 = vmatmul.msk.bf16.gmra.mxu3 %vm372_vm0, %v690_v2 }
  0x51   :  { %417 = vmatmul.bf16.gmra.mxu0 %v662_v9 }
  0x52   :  { %460 = vmatmul.bf16.gmra.mxu1 %v666_v10 }
  0x53   :  { %503 = vmatmul.bf16.gmra.mxu2 %v670_v11 }
  0x58   :  { %812 = vmatmul.msk.bf16.gmra.mxu3 %vm372_vm0, %v706_v14 }
  0x61   :  { %422 = vmatmul.bf16.gmra.mxu0 %v678_v21 }
  0x62   :  { %465 = vmatmul.bf16.gmra.mxu1 %v682_v22 }
  0x63   :  { %508 = vmatmul.bf16.gmra.mxu2 %v686_v23 }
  0x68   :  { %813 = vmatmul.msk.bf16.gmra.mxu3 %vm372_vm0, %v200_v26 }
  0x71   :  { %427 = vmatmul.bf16.gmra.mxu0 %v694_v33 }
  0x72   :  { %470 = vmatmul.bf16.gmra.mxu1 %v698_v34 }
  0x73   :  { %513 = vmatmul.bf16.gmra.mxu2 %v702_v35 }
  0x81   :  { %432 = vmatmul.bf16.gmra.mxu0 %v197_v40 }
  0x82   :  { %475 = vmatmul.bf16.gmra.mxu1 %v198_v41 }
  0x83   :  { %518 = vmatmul.bf16.gmra.mxu2 %v199_v42 }
  0x8b   :  { %v532_v43 = vpop.f32.mrf.mxu3 }
  0x93   :  { %v534_v44 = vpop.f32.mrf.mxu3 }
  0x9b   :  { %v537_v49 = vpop.f32.mrf.mxu3 }
  0x9e   :  { %v403_v46 = vpop.f32.mrf.mxu0 }
  0x9f   :  { %v446_v47 = vpop.f32.mrf.mxu1  ;;  %v404_v48 = vadd.f32 %v1119_v45, %v403_v46 }
  0xa1   :  { %v447_v50 = vadd.f32 %v446_v47, %v404_v48 }
  0xa3   :  { %v539_v55 = vpop.f32.mrf.mxu3 }
  0xa6   :  { %v489_v51 = vpop.f32.mrf.mxu2  ;;  %v405_v53 = vpop.f32.mrf.mxu0 }
  0xa7   :  { %v490_v52 = vadd.f32 %v489_v51, %v447_v50  ;;  %v448_v54 = vpop.f32.mrf.mxu1  ;;  %v406_v57 = vadd.f32 %v1119_v45, %v405_v53 }
  0xa9   :  { %v533_v56 = vadd.f32 %v532_v43, %v490_v52  ;;  %v449_v60 = vadd.f32 %v448_v54, %v406_v57 }
  0xab   :  { %v566_v58 = vmax.f32 %v533_v56, 0.0  ;;  %v542_v2 = vpop.f32.mrf.mxu3 }
  0xad   :  { %v579_v59 = vpack.c.bf16 %v566_v58, %v566_v58 }
  0xae   :  { %v491_v61 = vpop.f32.mrf.mxu2  ;;  %v408_v63 = vpop.f32.mrf.mxu0 }
  0xaf   :  { %593 = vst.msk [vmem:[%s1188_s3] sm:$0xf] %vm592_vm1, %v579_v59  ;;  %v492_v62 = vadd.f32 %v491_v61, %v449_v60  ;;  %v451_v0 = vpop.f32.mrf.mxu1  ;;  %v409_v1 = vadd.f32 %v1119_v45, %v408_v63 }
  0xb1   :  { %v535_v3 = vadd.f32 %v534_v44, %v492_v62  ;;  %v452_v5 = vadd.f32 %v451_v0, %v409_v1 }
  0xb3   :  { %v567_v4 = vmax.f32 %v535_v3, 0.0  ;;  %v544_v11 = vpop.f32.mrf.mxu3 }
  0xb5   :  { %v580_v6 = vpack.c.bf16 %v567_v4, %v567_v4 }
  0xb6   :  { %v494_v7 = vpop.f32.mrf.mxu2  ;;  %v410_v9 = vpop.f32.mrf.mxu0 }
  0xb7   :  { %594 = vst.msk [vmem:[%s1188_s3 + $0x4] sm:$0xf] %vm592_vm1, %v580_v6  ;;  %v495_v8 = vadd.f32 %v494_v7, %v452_v5  ;;  %v453_v10 = vpop.f32.mrf.mxu1  ;;  %v411_v13 = vadd.f32 %v1119_v45, %v410_v9 }
  0xb9   :  { %v538_v12 = vadd.f32 %v537_v49, %v495_v8  ;;  %v454_v16 = vadd.f32 %v453_v10, %v411_v13 }
  0xbb   :  { %v568_v14 = vmax.f32 %v538_v12, 0.0  ;;  %v547_v22 = vpop.f32.mrf.mxu3 }
  0xbd   :  { %v581_v15 = vpack.c.bf16 %v568_v14, %v568_v14 }
  0xbe   :  { %v496_v17 = vpop.f32.mrf.mxu2  ;;  %v413_v19 = vpop.f32.mrf.mxu0 }
  0xbf   :  { %595 = vst.msk [vmem:[%s1188_s3 + $0x8] sm:$0xf] %vm592_vm1, %v581_v15  ;;  %v497_v18 = vadd.f32 %v496_v17, %v454_v16  ;;  %v456_v20 = vpop.f32.mrf.mxu1  ;;  %v414_v21 = vadd.f32 %v1119_v45, %v413_v19 }
  0xc1   :  { %v540_v23 = vadd.f32 %v539_v55, %v497_v18  ;;  %v457_v25 = vadd.f32 %v456_v20, %v414_v21 }
  0xc3   :  { %v569_v24 = vmax.f32 %v540_v23, 0.0  ;;  %v549_v31 = vpop.f32.mrf.mxu3 }
  0xc5   :  { %v582_v26 = vpack.c.bf16 %v569_v24, %v569_v24 }
  0xc6   :  { %v499_v27 = vpop.f32.mrf.mxu2  ;;  %v415_v29 = vpop.f32.mrf.mxu0 }
  0xc7   :  { %596 = vst.msk [vmem:[%s1188_s3 + $0xc] sm:$0xf] %vm592_vm1, %v582_v26  ;;  %v500_v28 = vadd.f32 %v499_v27, %v457_v25  ;;  %v458_v30 = vpop.f32.mrf.mxu1  ;;  %v416_v33 = vadd.f32 %v1119_v45, %v415_v29 }
  0xc9   :  { %v543_v32 = vadd.f32 %v542_v2, %v500_v28  ;;  %v459_v36 = vadd.f32 %v458_v30, %v416_v33 }
  0xcb   :  { %v570_v34 = vmax.f32 %v543_v32, 0.0  ;;  %v552_v42 = vpop.f32.mrf.mxu3 }
  0xcd   :  { %v583_v35 = vpack.c.bf16 %v570_v34, %v570_v34 }
  0xce   :  { %v501_v37 = vpop.f32.mrf.mxu2  ;;  %v418_v39 = vpop.f32.mrf.mxu0 }
  0xcf   :  { %597 = vst.msk [vmem:[%s1188_s3 + $0x10] sm:$0xf] %vm592_vm1, %v583_v35  ;;  %v502_v38 = vadd.f32 %v501_v37, %v459_v36  ;;  %v461_v40 = vpop.f32.mrf.mxu1  ;;  %v419_v41 = vadd.f32 %v1119_v45, %v418_v39 }
  0xd1   :  { %v545_v43 = vadd.f32 %v544_v11, %v502_v38  ;;  %v462_v46 = vadd.f32 %v461_v40, %v419_v41 }
  0xd3   :  { %v571_v44 = vmax.f32 %v545_v43, 0.0  ;;  %v554_v52 = vpop.f32.mrf.mxu3 }
  0xd5   :  { %v584_v47 = vpack.c.bf16 %v571_v44, %v571_v44 }
  0xd6   :  { %v504_v48 = vpop.f32.mrf.mxu2  ;;  %v420_v50 = vpop.f32.mrf.mxu0 }
  0xd7   :  { %598 = vst.msk [vmem:[%s1188_s3 + $0x14] sm:$0xf] %vm592_vm1, %v584_v47  ;;  %v505_v49 = vadd.f32 %v504_v48, %v462_v46  ;;  %v463_v51 = vpop.f32.mrf.mxu1  ;;  %v421_v54 = vadd.f32 %v1119_v45, %v420_v50 }
  0xd9   :  { %v548_v53 = vadd.f32 %v547_v22, %v505_v49  ;;  %v464_v57 = vadd.f32 %v463_v51, %v421_v54 }
  0xdb   :  { %v572_v55 = vmax.f32 %v548_v53, 0.0  ;;  %v557_v63 = vpop.f32.mrf.mxu3 }
  0xdd   :  { %v585_v56 = vpack.c.bf16 %v572_v55, %v572_v55 }
  0xde   :  { %v506_v58 = vpop.f32.mrf.mxu2  ;;  %v423_v60 = vpop.f32.mrf.mxu0 }
  0xdf   :  { %599 = vst.msk [vmem:[%s1188_s3 + $0x18] sm:$0xf] %vm592_vm1, %v585_v56  ;;  %v507_v59 = vadd.f32 %v506_v58, %v464_v57  ;;  %v466_v61 = vpop.f32.mrf.mxu1  ;;  %v424_v62 = vadd.f32 %v1119_v45, %v423_v60 }
  0xe1   :  { %v550_v0 = vadd.f32 %v549_v31, %v507_v59  ;;  %v467_v2 = vadd.f32 %v466_v61, %v424_v62 }
  0xe3   :  { %v573_v1 = vmax.f32 %v550_v0, 0.0  ;;  %v559_v8 = vpop.f32.mrf.mxu3 }
  0xe5   :  { %v586_v3 = vpack.c.bf16 %v573_v1, %v573_v1 }
  0xe6   :  { %v509_v4 = vpop.f32.mrf.mxu2  ;;  %v425_v6 = vpop.f32.mrf.mxu0 }
  0xe7   :  { %600 = vst.msk [vmem:[%s1188_s3 + $0x1c] sm:$0xf] %vm592_vm1, %v586_v3  ;;  %v510_v5 = vadd.f32 %v509_v4, %v467_v2  ;;  %v468_v7 = vpop.f32.mrf.mxu1  ;;  %v426_v10 = vadd.f32 %v1119_v45, %v425_v6 }
  0xe9   :  { %v553_v9 = vadd.f32 %v552_v42, %v510_v5  ;;  %v469_v13 = vadd.f32 %v468_v7, %v426_v10 }
  0xeb   :  { %v574_v11 = vmax.f32 %v553_v9, 0.0  ;;  %v562_v19 = vpop.f32.mrf.mxu3 }
  0xed   :  { %v587_v12 = vpack.c.bf16 %v574_v11, %v574_v11 }
  0xee   :  { %v511_v14 = vpop.f32.mrf.mxu2  ;;  %v428_v16 = vpop.f32.mrf.mxu0 }
  0xef   :  { %601 = vst.msk [vmem:[%s1188_s3 + $0x20] sm:$0xf] %vm592_vm1, %v587_v12  ;;  %v512_v15 = vadd.f32 %v511_v14, %v469_v13  ;;  %v471_v17 = vpop.f32.mrf.mxu1  ;;  %v429_v18 = vadd.f32 %v1119_v45, %v428_v16 }
  0xf1   :  { %v555_v20 = vadd.f32 %v554_v52, %v512_v15  ;;  %v472_v22 = vadd.f32 %v471_v17, %v429_v18 }
  0xf3   :  { %v575_v21 = vmax.f32 %v555_v20, 0.0  ;;  %v564_v28 = vpop.f32.mrf.mxu3 }
  0xf5   :  { %v588_v23 = vpack.c.bf16 %v575_v21, %v575_v21 }
  0xf6   :  { %v514_v24 = vpop.f32.mrf.mxu2  ;;  %v430_v26 = vpop.f32.mrf.mxu0 }
  0xf7   :  { %602 = vst.msk [vmem:[%s1188_s3 + $0x24] sm:$0xf] %vm592_vm1, %v588_v23  ;;  %v515_v25 = vadd.f32 %v514_v24, %v472_v22  ;;  %v473_v27 = vpop.f32.mrf.mxu1  ;;  %v431_v30 = vadd.f32 %v1119_v45, %v430_v26 }
  0xf9   :  { %v558_v29 = vadd.f32 %v557_v63, %v515_v25  ;;  %v474_v33 = vadd.f32 %v473_v27, %v431_v30 }
  0xfb   :  { %v576_v31 = vmax.f32 %v558_v29, 0.0 }
  0xfd   :  { %v589_v32 = vpack.c.bf16 %v576_v31, %v576_v31 }
  0xfe   :  { %v516_v34 = vpop.f32.mrf.mxu2  ;;  %v433_v36 = vpop.f32.mrf.mxu0 }
  0xff   :  { %603 = vst.msk [vmem:[%s1188_s3 + $0x28] sm:$0xf] %vm592_vm1, %v589_v32  ;;  %v517_v35 = vadd.f32 %v516_v34, %v474_v33  ;;  %v476_v37 = vpop.f32.mrf.mxu1  ;;  %v434_v38 = vadd.f32 %v1119_v45, %v433_v36 }
 0x101   :  { %v560_v39 = vadd.f32 %v559_v8, %v517_v35  ;;  %v477_v41 = vadd.f32 %v476_v37, %v434_v38 }
 0x103   :  { %v577_v40 = vmax.f32 %v560_v39, 0.0 }
 0x105   :  { %v590_v42 = vpack.c.bf16 %v577_v40, %v577_v40 }
 0x106   :  { %v519_v43 = vpop.f32.mrf.mxu2  ;;  %v435_v46 = vpop.f32.mrf.mxu0 }
 0x107   :  { %604 = vst.msk [vmem:[%s1188_s3 + $0x2c] sm:$0xf] %vm592_vm1, %v590_v42  ;;  %v520_v44 = vadd.f32 %v519_v43, %v477_v41  ;;  %v478_v47 = vpop.f32.mrf.mxu1 }
 0x109   :  { %v563_v48 = vadd.f32 %v562_v19, %v520_v44 }
 0x10b   :  { %v578_v49 = vmax.f32 %v563_v48, 0.0 }
 0x10d   :  { %v591_v50 = vpack.c.bf16 %v578_v49, %v578_v49 }
 0x10e   :  { %v521_v51 = vpop.f32.mrf.mxu2 }
 0x10f   :  { %606 = vst.msk [vmem:[%s1188_s3 + $0x30] sm:$0x1] %vm605_vm2, %v591_v50 }

// kernel: dqn_forward.5
= control target key start
LH: loop header
LB: loop body
LE: loop exit
PB: predicated region body
PF: predicated region fallthrough
CT: control target
= control target key end

     0   :  { %s1223_s0 = inlined_call_operand.vmem [shape: bf16[8,800], index: 0, kind: input, shape index: {}]   ;;  %s1224_s1 = inlined_call_operand.vmem [shape: bf16[800,32], index: 1, kind: input, shape index: {}]   ;;  %s1225_s2 = inlined_call_operand.vmem [shape: f32[1,32], index: 2, kind: input, shape index: {}]   ;;  %s1226_s3 = inlined_call_operand.vmem [shape: f32[128,4], index: 3, kind: input, shape index: {}]   ;;  %s1227_s4 = inlined_call_operand.vmem [shape: f32[1,4], index: 4, kind: input, shape index: {}]   ;;  %s1228_s5 = inlined_call_operand.hbm [shape: f32[2,4], index: 5, kind: output, shape index: {}]  }
   0x1   :  { %v896_v0 = vld [vmem:[%s1224_s1 + $0x38] sm:$0xff]  ;;  %v895_v3 = vld [vmem:[%s1224_s1 + $0x30] sm:$0xff]  ;;  %v894_v8 = vld [vmem:[%s1224_s1 + $0x28] sm:$0xff] }
   0x2   :  { %v904_v1 = vld [vmem:[%s1224_s1 + $0x78] sm:$0xff]  ;;  %458 = vmatpush.bf16.msra.mxu0 %v896_v0  ;;  %v903_v4 = vld [vmem:[%s1224_s1 + $0x70] sm:$0xff]  ;;  %v902_v9 = vld [vmem:[%s1224_s1 + $0x68] sm:$0xff] }
   0x3   :  { %v912_v2 = vld [vmem:[%s1224_s1 + $0xb8] sm:$0xff]  ;;  %471 = vmatpush.bf16.msra.mxu1 %v904_v1  ;;  %v911_v5 = vld [vmem:[%s1224_s1 + $0xb0] sm:$0xff]  ;;  %v910_v10 = vld [vmem:[%s1224_s1 + $0xa8] sm:$0xff] }
   0x4   :  { %484 = vmatpush.bf16.msra.mxu2 %v912_v2  ;;  %v920_v6 = vld [vmem:[%s1224_s1 + $0xf8] sm:$0xff]  ;;  %v919_v7 = vld [vmem:[%s1224_s1 + $0xf0] sm:$0xff]  ;;  %v918_v11 = vld [vmem:[%s1224_s1 + $0xe8] sm:$0xff] }
   0x5   :  { %497 = vmatpush.bf16.msra.mxu3 %v920_v6  ;;  %v893_v12 = vld [vmem:[%s1224_s1 + $0x20] sm:$0xff]  ;;  %v892_v16 = vld [vmem:[%s1224_s1 + $0x18] sm:$0xff] }
   0x6   :  { %459 = vmatpush.bf16.msra.mxu0 %v895_v3  ;;  %v901_v13 = vld [vmem:[%s1224_s1 + $0x60] sm:$0xff]  ;;  %v900_v17 = vld [vmem:[%s1224_s1 + $0x58] sm:$0xff] }
   0x7   :  { %472 = vmatpush.bf16.msra.mxu1 %v903_v4  ;;  %v909_v14 = vld [vmem:[%s1224_s1 + $0xa0] sm:$0xff]  ;;  %v908_v18 = vld [vmem:[%s1224_s1 + $0x98] sm:$0xff] }
   0x8   :  { %485 = vmatpush.bf16.msra.mxu2 %v911_v5  ;;  %v917_v15 = vld [vmem:[%s1224_s1 + $0xe0] sm:$0xff] }
   0x9   :  { %498 = vmatpush.bf16.msra.mxu3 %v919_v7 }
   0xa   :  { %460 = vmatpush.bf16.msra.mxu0 %v894_v8 }
   0xb   :  { %473 = vmatpush.bf16.msra.mxu1 %v902_v9 }
   0xc   :  { %486 = vmatpush.bf16.msra.mxu2 %v910_v10 }
   0xd   :  { %499 = vmatpush.bf16.msra.mxu3 %v918_v11 }
   0xe   :  { %461 = vmatpush.bf16.msra.mxu0 %v893_v12 }
   0xf   :  { %474 = vmatpush.bf16.msra.mxu1 %v901_v13 }
  0x10   :  { %487 = vmatpush.bf16.msra.mxu2 %v909_v14 }
  0x11   :  { %10 = vsyncpa [#allocation3], 0  ;;  %500 = vmatpush.bf16.msra.mxu3 %v917_v15  ;;  %v916_v19 = vld [vmem:[%s1224_s1 + $0xd8] sm:$0xff]  ;;  %v891_v20 = vld [vmem:[%s1224_s1 + $0x10] sm:$0xff]  ;;  %vm454_vm0 = vcmask 261120   ;;  %s968_s7 = smov [#allocation2]  }
  0x12   :  { %462 = vmatpush.bf16.msra.mxu0 %v892_v16  ;;  %v899_v21 = vld [vmem:[%s1224_s1 + $0x50] sm:$0xff]  ;;  %v890_v24 = vld [vmem:[%s1224_s1 + $0x8] sm:$0xff]  ;;  %v22_v26 = vld [vmem:[%s1223_s0] sm:$0xff]  ;;  %s673_s8 = sshll.u32 %s968_s7, 4  ;;  %s675_s10 = sshll.u32 %s1228_s5, 4  ;;  %vm666_vm1 = vcmask 25600   ;;  %s674_s8 = int_to_ptr.vmem [resolvable:$true] %s673_s8  ;;  %s676_s10 = int_to_ptr.hbm [resolvable:$true] %s675_s10 }
  0x13   :  { %475 = vmatpush.bf16.msra.mxu1 %v900_v17  ;;  %v907_v22 = vld [vmem:[%s1224_s1 + $0x90] sm:$0xff]  ;;  %v898_v25 = vld [vmem:[%s1224_s1 + $0x48] sm:$0xff]  ;;  %v134_v29 = vunpack.c.l.b16 %v22_v26  ;;  %v135_v31 = vunpack.c.h.b16 %v22_v26  ;;  %v889_v32 = vld [vmem:[%s1224_s1] sm:$0xff] }
  0x14   :  { %488 = vmatpush.bf16.msra.mxu2 %v908_v18  ;;  %v915_v23 = vld [vmem:[%s1224_s1 + $0xd0] sm:$0xff]  ;;  %v906_v27 = vld [vmem:[%s1224_s1 + $0x88] sm:$0xff]  ;;  %v897_v33 = vld [vmem:[%s1224_s1 + $0x40] sm:$0xff] }
  0x15   :  { %501 = vmatpush.bf16.msra.mxu3 %v916_v19  ;;  %v23_v28 = vld [vmem:[%s1223_s0 + $0x8] sm:$0xff]  ;;  %v928_v34 = vld [vmem:[%s1224_s1 + $0x138] sm:$0xff]  ;;  %v905_v36 = vld [vmem:[%s1224_s1 + $0x80] sm:$0xff]  ;;  %v141_v38 = vpack.c.b16 %v134_v29, %v134_v29  ;;  %v142_v39 = vpack.c.b16 %v135_v31, %v135_v31 }
  0x16   :  { %463 = vmatpush.bf16.msra.mxu0 %v891_v20  ;;  %v914_v30 = vld [vmem:[%s1224_s1 + $0xc8] sm:$0xff]  ;;  %v936_v35 = vld [vmem:[%s1224_s1 + $0x178] sm:$0xff]  ;;  %v136_v37 = vunpack.c.l.b16 %v23_v28  ;;  %v137_v40 = vunpack.c.h.b16 %v23_v28  ;;  %v913_v41 = vld [vmem:[%s1224_s1 + $0xc0] sm:$0xff] }
  0x17   :  { %476 = vmatpush.bf16.msra.mxu1 %v899_v21  ;;  %v938_v42 = vld [vmem:[%s1224_s1 + $0x188] sm:$0xff]  ;;  %v927_v43 = vld [vmem:[%s1224_s1 + $0x130] sm:$0xff]  ;;  %v937_v47 = vld [vmem:[%s1224_s1 + $0x180] sm:$0xff] }
  0x18   :  { %489 = vmatpush.bf16.msra.mxu2 %v907_v22  ;;  %v935_v44 = vld [vmem:[%s1224_s1 + $0x170] sm:$0xff]  ;;  %v143_v45 = vpack.c.b16 %v136_v37, %v136_v37  ;;  %v144_v46 = vpack.c.b16 %v137_v40, %v137_v40  ;;  %v926_v48 = vld [vmem:[%s1224_s1 + $0x128] sm:$0xff]  ;;  %v925_v50 = vld [vmem:[%s1224_s1 + $0x120] sm:$0xff] }
  0x19   :  { %502 = vmatpush.bf16.msra.mxu3 %v915_v23  ;;  %v934_v49 = vld [vmem:[%s1224_s1 + $0x168] sm:$0xff]  ;;  %v933_v51 = vld [vmem:[%s1224_s1 + $0x160] sm:$0xff]  ;;  %v25_v52 = vld [vmem:[%s1223_s0 + $0x18] sm:$0xf] }
  0x1a   :  { %464 = vmatpush.bf16.msra.mxu0 %v890_v24  ;;  %v924_v53 = vld [vmem:[%s1224_s1 + $0x118] sm:$0xff]  ;;  %v140_v55 = vunpack.c.l.b16 %v25_v52  ;;  %v923_v56 = vld [vmem:[%s1224_s1 + $0x110] sm:$0xff]  ;;  %v922_v59 = vld [vmem:[%s1224_s1 + $0x108] sm:$0xff] }
  0x1b   :  { %477 = vmatpush.bf16.msra.mxu1 %v898_v25  ;;  %v932_v54 = vld [vmem:[%s1224_s1 + $0x158] sm:$0xff]  ;;  %v931_v57 = vld [vmem:[%s1224_s1 + $0x150] sm:$0xff]  ;;  %v930_v60 = vld [vmem:[%s1224_s1 + $0x148] sm:$0xff] }
  0x1c   :  { %490 = vmatpush.bf16.msra.mxu2 %v906_v27  ;;  %v147_v58 = vpack.c.b16 %v140_v55, %v140_v55  ;;  %v24_v61 = vld [vmem:[%s1223_s0 + $0x10] sm:$0xff]  ;;  %v921_v0 = vld [vmem:[%s1224_s1 + $0x100] sm:$0xff]  ;;  %v557_v4 = vld [vmem:[%s1226_s3 + $0x18] sm:$0xff] }
  0x1d   :  { %503 = vmatpush.bf16.msra.mxu3 %v914_v30  ;;  %v138_v62 = vunpack.c.l.b16 %v24_v61  ;;  %v139_v63 = vunpack.c.h.b16 %v24_v61  ;;  %v929_v1 = vld [vmem:[%s1224_s1 + $0x140] sm:$0xff]  ;;  %v556_v5 = vld [vmem:[%s1226_s3 + $0x10] sm:$0xff]  ;;  %v613_v8 = vld [vmem:[%s1226_s3 + $0x58] sm:$0xff] }
  0x1e   :  { %465 = vmatpush.bf16.msra.mxu0 %v889_v32  ;;  %v555_v9 = vld [vmem:[%s1226_s3 + $0x8] sm:$0xff]  ;;  %v612_v10 = vld [vmem:[%s1226_s3 + $0x50] sm:$0xff]  ;;  %v554_v11 = vld [vmem:[%s1226_s3] sm:$0xff] }
  0x1f   :  { %478 = vmatpush.bf16.msra.mxu1 %v897_v33  ;;  %v145_v2 = vpack.c.b16 %v138_v62, %v138_v62  ;;  %v146_v3 = vpack.c.b16 %v139_v63, %v139_v63  ;;  %v611_v12 = vld [vmem:[%s1226_s3 + $0x48] sm:$0xff]  ;;  %v585_v13 = vld [vmem:[%s1226_s3 + $0x38] sm:$0xff]  ;;  %v610_v14 = vld [vmem:[%s1226_s3 + $0x40] sm:$0xff] }
  0x20   :  { %491 = vmatpush.bf16.msra.mxu2 %v905_v36  ;;  %v584_v15 = vld [vmem:[%s1226_s3 + $0x30] sm:$0xff]  ;;  %v583_v18 = vld [vmem:[%s1226_s3 + $0x28] sm:$0xff]  ;;  %v582_v21 = vld [vmem:[%s1226_s3 + $0x20] sm:$0xff] }
  0x21   :  { %466 = vmatmul.bf16.vlgmr.msra.gmra.mxu0 %v141_v38  ;;  %504 = vmatpush.bf16.msra.mxu3 %v913_v41  ;;  %v940_v22 = vld [vmem:[%s1225_s2] ss:$0 sm:$0xff]  ;;  %v641_v37 = vld [vmem:[%s1226_s3 + $0x78] sm:$0xff]  ;;  %v640_v41 = vld [vmem:[%s1226_s3 + $0x70] sm:$0xff] }
  0x22   :  { %510 = vmatpush.bf16.msrb.mxu0 %v928_v34  ;;  %479 = vmatmul.bf16.vlgmr.msra.gmra.mxu1 %v142_v39 }
  0x23   :  { %523 = vmatpush.bf16.msrb.mxu1 %v936_v35  ;;  %492 = vmatmul.bf16.vlgmr.msra.gmra.mxu2 %v143_v45 }
  0x24   :  { %542 = vmatpush.bf16.msrb.mxu2 %v938_v42  ;;  %505 = vmatmul.bf16.vlgmr.msra.gmra.mxu3 %v144_v46  ;;  %v639_v42 = vld [vmem:[%s1226_s3 + $0x68] sm:$0xff] }
  0x25   :  { %573 = vmatpush.msrb.mxu3 %v557_v4 }
  0x26   :  { %511 = vmatpush.bf16.msrb.mxu0 %v927_v43  ;;  %v638_v43 = vld [vmem:[%s1226_s3 + $0x60] sm:$0xff] }
  0x27   :  { %524 = vmatpush.bf16.msrb.mxu1 %v935_v44  ;;  %574 = vmatpush.msrb.mxu3 %v556_v5 }
  0x28   :  { %543 = vmatpush.bf16.msrb.mxu2 %v937_v47  ;;  %v941_v47 = vld [vmem:[%s1227_s4] ss:$0 sm:$0xff] }
  0x29   :  { %575 = vmatpush.msrb.mxu3 %v555_v9 }
  0x2a   :  { %512 = vmatpush.bf16.msrb.mxu0 %v926_v48 }
  0x2b   :  { %525 = vmatpush.bf16.msrb.mxu1 %v934_v49  ;;  %576 = vmatpush.msrb.mxu3 %v554_v11 }
  0x2c   :  { %629 = vmatpush.msra.mxu2 %v613_v8 }
  0x2d   :  { %601 = vmatpush.msra.mxu3 %v585_v13 }
  0x2e   :  { %513 = vmatpush.bf16.msrb.mxu0 %v925_v50  ;;  %630 = vmatpush.msra.mxu2 %v612_v10 }
  0x2f   :  { %526 = vmatpush.bf16.msrb.mxu1 %v933_v51  ;;  %602 = vmatpush.msra.mxu3 %v584_v15 }
  0x30   :  { %631 = vmatpush.msra.mxu2 %v611_v12 }
  0x31   :  { %603 = vmatpush.msra.mxu3 %v583_v18 }
  0x32   :  { %514 = vmatpush.bf16.msrb.mxu0 %v924_v53  ;;  %632 = vmatpush.msra.mxu2 %v610_v14 }
  0x33   :  { %527 = vmatpush.bf16.msrb.mxu1 %v932_v54  ;;  %884 = vmatmul.msk.bf16.vlgmr.msrb.gmra.mxu2 %vm454_vm0, %v147_v58 }
  0x34   :  { %604 = vmatpush.msra.mxu3 %v582_v21 }
  0x36   :  { %515 = vmatpush.bf16.msrb.mxu0 %v923_v56 }
  0x37   :  { %528 = vmatpush.bf16.msrb.mxu1 %v931_v57 }
  0x3a   :  { %516 = vmatpush.bf16.msrb.mxu0 %v922_v59 }
  0x3b   :  { %529 = vmatpush.bf16.msrb.mxu1 %v930_v60 }
  0x3e   :  { %517 = vmatpush.bf16.msrb.mxu0 %v921_v0 }
  0x3f   :  { %530 = vmatpush.bf16.msrb.mxu1 %v929_v1 }
  0x41   :  { %518 = vmatmul.bf16.vlgmr.msrb.gmra.mxu0 %v145_v2 }
  0x42   :  { %531 = vmatmul.bf16.vlgmr.msrb.gmra.mxu1 %v146_v3 }
  0x9e   :  { %v467_v6 = vpop.f32.mrf.mxu0 }
  0x9f   :  { %v480_v7 = vpop.f32.mrf.mxu1  ;;  %v468_v23 = vadd.f32 %v940_v22, %v467_v6 }
  0xa1   :  { %v481_v26 = vadd.f32 %v480_v7, %v468_v23 }
  0xa6   :  { %v469_v16 = vpop.f32.mrf.mxu0  ;;  %v493_v19 = vpop.f32.mrf.mxu2 }
  0xa7   :  { %v482_v17 = vpop.f32.mrf.mxu1  ;;  %v506_v20 = vpop.f32.mrf.mxu3  ;;  %v494_v27 = vadd.f32 %v493_v19, %v481_v26 }
  0xa9   :  { %v507_v29 = vadd.f32 %v506_v20, %v494_v27 }
  0xae   :  { %v495_v24 = vpop.f32.mrf.mxu2 }
  0xaf   :  { %v508_v25 = vpop.f32.mrf.mxu3 }
  0xb6   :  { %v545_v28 = vpop.f32.mrf.mxu2 }
  0xbe   :  { %v519_v30 = vpop.f32.mrf.mxu0  ;;  %v547_v34 = vpop.f32.mrf.mxu2 }
  0xbf   :  { %v532_v31 = vpop.f32.mrf.mxu1  ;;  %v520_v32 = vadd.f32 %v519_v30, %v507_v29 }
  0xc1   :  { %v533_v33 = vadd.f32 %v532_v31, %v520_v32 }
  0xc3   :  { %v546_v35 = vadd.f32 %v545_v28, %v533_v33 }
  0xc5   :  { %v549_v36 = vmax.f32 %v546_v35, 0.0 }
  0xc6   :  { %v521_v38 = vpop.f32.mrf.mxu0 }
  0xc7   :  { %v534_v39 = vpop.f32.mrf.mxu1  ;;  %v614_v40 = vrot.slane %v549_v36, 4  ;;  %885 = vmatmul.msk.f32.vlgmr.msrb.gmra.mxu3 %vm454_vm0, %v549_v36  ;;  %v586_v44 = vrot.slane %v549_v36, 2  ;;  %v642_v45 = vrot.slane %v549_v36, 6 }
  0xc8   :  { %657 = vmatpush.msrb.mxu3 %v641_v37 }
  0xc9   :  { %887 = vmatmul.msk.f32.vlgmr.msra.gmra.mxu2 %vm454_vm0, %v614_v40 }
  0xca   :  { %658 = vmatpush.msrb.mxu3 %v640_v41 }
  0xcc   :  { %659 = vmatpush.msrb.mxu3 %v639_v42 }
  0xce   :  { %660 = vmatpush.msrb.mxu3 %v638_v43 }
  0xcf   :  { %886 = vmatmul.msk.f32.vlgmr.msra.gmra.mxu3 %vm454_vm0, %v586_v44 }
  0xd7   :  { %888 = vmatmul.msk.f32.vlgmr.msrb.gmra.mxu3 %vm454_vm0, %v642_v45 }
 0x14a   :  { %v578_v46 = vpop.f32.mrf.mxu3 }
 0x14b   :  { %v581_v49 = vadd.f32 %v941_v47, %v578_v46 }
 0x14c   :  { %v634_v51 = vpop.f32.mrf.mxu2 }
 0x152   :  { %v606_v48 = vpop.f32.mrf.mxu3 }
 0x153   :  { %v609_v50 = vadd.f32 %v606_v48, %v581_v49 }
 0x155   :  { %v637_v52 = vadd.f32 %v634_v51, %v609_v50 }
 0x15a   :  { %v662_v53 = vpop.f32.mrf.mxu3 }
 0x15b   :  { %v665_v54 = vadd.f32 %v662_v53, %v637_v52 }
 0x15d   :  { %667 = vst.msk [vmem:[#allocation2] sm:$0x3] %vm666_vm1, %v665_v54 }
 0x15e   :  { %678 = dma.vmem_to_hbm [thread:$0]  %s674_s8, 32, %s676_s10, [#allocation3]  }
 0x15f   :  { %966 = dma.done.wait [#allocation3], 32  }
 0x160   :  { %967 = vsyncadd [#allocation3], 4294967264 }
 0x161   :  { %683 = vsyncpa [#allocation3], 1 }

</bundles_post_ra>
